<compile_context>
chip_gen: v6e
topology: v6e:2x2x1
jax: 0.10.0
libtpu: 0.0.40
codegen_flags: <defaults>
</compile_context>

<pallas_src>
import jax
import jax.numpy as jnp
from jax.experimental import pallas as pl
from jax.experimental.pallas import tpu as pltpu

EMBED_DIM = 300                 # Conv2d kernel_size=(k, 300) implies embedding dim 300
N_FILTERS = 40                  # module-level `n_filters = 40`
KERNEL_SIZES = (2, 3, 5)
N_TAP_BLOCKS = max(KERNEL_SIZES)        # 5 tap-offset blocks
F_PAD = 128                             # one lane tile per tap block (3*40=120 used)
P = N_TAP_BLOCKS * F_PAD                # 640: fused projection width
OUT_LANES = 128                         # lane-dense output slab; col 0 holds the logit
NEG = -1e30                             # finite "minus infinity" for the pool mask


def conv_sentiment_kernel(emb_ref, w_ref, mask_ref, cb_ref, fw_ref, fb_ref, out_ref):
    # emb_ref:  (TB, S_pad, 300) bf16        w_ref:  (300, 640) bf16
    # mask_ref: (S_pad, 128) f32 additive validity mask (0 valid / -1e30 invalid)
    # cb_ref:   (1, 128) f32 packed conv biases   fw_ref: (1, 128) f32 packed fc1 weights
    # fb_ref:   (1,) f32 in SMEM                  out_ref: (TB, 128) f32
    TB, S_pad, E = emb_ref.shape
    M = TB * S_pad

    # One bf16 MXU matmul for all 3 convs x 5 tap offsets (f32 accumulation).
    # S_pad % 16 == 0 keeps this reshape layout-preserving for bf16 (no relayout).
    x = emb_ref[...].reshape(M, E)
    y = jnp.dot(x, w_ref[...], preferred_element_type=jnp.float32)   # (M, 640) f32

    # Shift-add over tap offsets via XLU sublane rotations: acc[p] += y[p + t].
    # Cross-row wrap-around from the roll only lands on positions p >= S_pad - t,
    # which the validity mask removes before the max-pool (S_pad >= S_real).
    acc = y[:, 0:F_PAD]
    for t in range(1, N_TAP_BLOCKS):                 # static loop -> fully unrolled
        blk = y[:, t * F_PAD:(t + 1) * F_PAD]        # 128-aligned lane slice (cheap)
        acc = acc + pltpu.roll(blk, M - t, 0)        # == jnp.roll(blk, -t, axis=0)

    acc = acc.reshape(TB, S_pad, F_PAD) + mask_ref[...][None, :, :]

    # TODO(synk): nn.Dropout omitted (inference identity); train mode would mask
    # `pooled` with pltpu.prng_seed / pltpu.prng_random_bits.
    # max-pool over valid positions, then bias + ReLU once per (TB, 128) tile
    # (valid since relu(max(x) + b) == max(relu(x + b)) for constant b).
    pooled = jnp.maximum(jnp.max(acc, axis=1) + cb_ref[...], 0.0)     # (TB, 128)

    # fc1 as VPU multiply + lane reduction; padded lanes carry zero weights.
    res = jnp.sum(pooled * fw_ref[...], axis=-1, keepdims=True) + fb_ref[0]   # (TB, 1)
    out_ref[...] = jnp.broadcast_to(res, (TB, OUT_LANES))   # lane-dense store


def _round_up(x, m):
    return (x + m - 1) // m * m


def _vmem_budgets():
    # Generation-aware sizing: v5e/v6e have 128 MiB physical VMEM, v7x has 64 MiB.
    try:
        cap = pltpu.get_tpu_info().vmem_capacity_bytes
    except Exception:
        cap = 64 * 1024 * 1024
    if cap >= 96 * 1024 * 1024:
        return 24 * 1024 * 1024, 48 * 1024 * 1024     # (data budget, scoped limit)
    return 12 * 1024 * 1024, 32 * 1024 * 1024


def _choose_batch_tile(B, S_pad, data_budget):
    # Per batch row per step (bytes): double-buffered bf16 emb tile (lanes pad
    # 300->384 in VMEM) + f32 projection y (640 lanes) + acc / rolled temporaries.
    per_row = S_pad * (2 * 2 * 384 + 4 * P + 4 * 4 * F_PAD)
    fixed = 2 * 1024 * 1024          # resident weights, mask, output, headroom
    tb = max(8, ((data_budget - fixed) // per_row) // 8 * 8)
    B8 = _round_up(B, 8)
    tb = min(tb, B8)
    if tb >= B8 and B8 >= 16:        # keep >= 2 grid steps (v7x megacore / pipelining)
        tb = _round_up(B8 // 2, 8)
    return tb


def conv_sentiment_forward(input_words, params):
    """Replicates ConvSentiment.forward (inference). Returns shape (B,) float32."""
    # Embedding lookup (gather) stays in plain-JAX glue.
    emb = jnp.take(params['embedding'], input_words, axis=0)      # (B, S, 300) f32
    B, S, E = emb.shape
    assert E == EMBED_DIM
    assert S >= max(KERNEL_SIZES), "sequence shorter than largest conv kernel"
    F = N_FILTERS

    data_budget, vmem_limit = _vmem_budgets()
    S_pad = _round_up(S, 16)             # bf16 sublane packing -> free in-kernel reshape
    TB = _choose_batch_tile(B, S_pad, data_budget)
    B_pad = _round_up(B, TB)

    # Single bf16 materialization of the activation; no 300->384 lane pad in HBM.
    emb_p = jnp.pad(emb.astype(jnp.bfloat16),
                    ((0, B_pad - B), (0, S_pad - S), (0, 0)))

    # Fused conv weight, packed per tap offset: block t (128 lanes) holds
    # [conv0 tap t | conv1 tap t | conv2 tap t | zeros] (40 lanes each; zeros
    # where tap t >= that conv's kernel size).
    names = ('conv0', 'conv1', 'conv2')
    w_all = jnp.zeros((EMBED_DIM, P), jnp.float32)
    cb = jnp.zeros((1, F_PAD), jnp.float32)
    for c, (name, k) in enumerate(zip(names, KERNEL_SIZES)):
        w = jnp.transpose(params[name + '_w'][:, 0], (1, 2, 0))   # (k, E, F)
        for t in range(k):
            w_all = w_all.at[:, t * F_PAD + c * F: t * F_PAD + (c + 1) * F].set(w[t])
        cb = cb.at[0, c * F:(c + 1) * F].set(params[name + '_b'])
    w_all = w_all.astype(jnp.bfloat16)

    # fc1 weights packed into the same 128-lane layout (cat order conv0|conv1|conv2).
    fw = jnp.zeros((1, F_PAD), jnp.float32).at[0, :3 * F].set(
        params['fc1_w'].reshape(3 * F))
    fb = params['fc1_b'].reshape(1).astype(jnp.float32)

    # Additive validity mask: position p is valid for conv c iff p < S - k_c + 1.
    pos = jnp.arange(S_pad)[:, None]
    lane = jnp.arange(F_PAD)[None, :]
    limit = jnp.where(lane < F, S - KERNEL_SIZES[0] + 1,
                      jnp.where(lane < 2 * F, S - KERNEL_SIZES[1] + 1,
                                S - KERNEL_SIZES[2] + 1))
    mask = jnp.where(pos < limit, 0.0, NEG).astype(jnp.float32)

    out = pl.pallas_call(
        conv_sentiment_kernel,
        out_shape=jax.ShapeDtypeStruct((B_pad, OUT_LANES), jnp.float32),
        grid=(B_pad // TB,),
        in_specs=[
            pl.BlockSpec((TB, S_pad, EMBED_DIM), lambda b: (b, 0, 0)),  # batch-tiled emb
            pl.BlockSpec((EMBED_DIM, P), lambda b: (0, 0)),             # fused conv weight
            pl.BlockSpec((S_pad, F_PAD), lambda b: (0, 0)),             # validity mask
            pl.BlockSpec((1, F_PAD), lambda b: (0, 0)),                 # conv biases
            pl.BlockSpec((1, F_PAD), lambda b: (0, 0)),                 # fc1 weights
            pl.BlockSpec(memory_space=pltpu.MemorySpace.SMEM),          # fc1 bias scalar
        ],
        out_specs=pl.BlockSpec((TB, OUT_LANES), lambda b: (b, 0)),
        compiler_params=pltpu.CompilerParams(
            dimension_semantics=("parallel",),
            vmem_limit_bytes=vmem_limit,
        ),
    )(emb_p, w_all, mask, cb, fw, fb)
    return out[:B, 0]     # matches torch .squeeze() for B > 1


def _reference(input_words, params):
    """Pure-JAX f32 reference of ConvSentiment.forward (inference)."""
    emb = jnp.take(params['embedding'], input_words, axis=0).astype(jnp.float32)
    B, S, E = emb.shape
    pools = []
    for name, k in zip(('conv0', 'conv1', 'conv2'), KERNEL_SIZES):
        w = params[name + '_w'][:, 0]          # (F, k, E)
        b = params[name + '_b']                # (F,)
        L = S - k + 1
        conv = jnp.stack(
            [jnp.einsum('bse,fse->bf', emb[:, t:t + k, :], w) for t in range(L)],
            axis=1) + b[None, None, :]
        pools.append(jnp.max(jnp.maximum(conv, 0.0), axis=1))
    comb = jnp.concatenate(pools, axis=1)
    return (comb @ params['fc1_w'].T + params['fc1_b']).squeeze()


def init_params(key, vocab_size):
    F = N_FILTERS
    keys = jax.random.split(key, 9)
    params = {
        'embedding': 0.1 * jax.random.normal(keys[0], (vocab_size, EMBED_DIM), jnp.float32),
        'fc1_w': 0.05 * jax.random.normal(keys[1], (1, 3 * F), jnp.float32),
        'fc1_b': 0.01 * jax.random.normal(keys[2], (1,), jnp.float32),
    }
    for idx, (name, k) in enumerate(zip(('conv0', 'conv1', 'conv2'), KERNEL_SIZES)):
        params[name + '_w'] = 0.05 * jax.random.normal(
            keys[3 + 2 * idx], (F, 1, k, EMBED_DIM), jnp.float32)
        params[name + '_b'] = 0.01 * jax.random.normal(
            keys[4 + 2 * idx], (F,), jnp.float32)
    return params


if __name__ == "__main__":
    key = jax.random.PRNGKey(0)
    p_key, id_key = jax.random.split(key)
    VOCAB, B, S = 50, 2, 8                     # seq >= largest kernel (5)
    params = init_params(p_key, VOCAB)
    input_words = jax.random.randint(id_key, (B, S), 0, VOCAB, dtype=jnp.int32)

    out = conv_sentiment_forward(input_words, params)
    out = jax.block_until_ready(out)
    assert out.shape == (B,) and out.dtype == jnp.float32
    ref = _reference(input_words, params)
    # bf16 matmul inputs -> slightly looser tolerance than pure-f32.
    assert jnp.allclose(out, ref, rtol=5e-2, atol=5e-3), (out, ref)
    print("KERNEL_OK")
</pallas_src>

<mosaic_0001>
module attributes {stable_mosaic.version = 11 : i64} {
  func.func @conv_sentiment_kernel(%arg0: i32, %arg1: memref<8x16x300xbf16, #tpu.memory_space<vmem>>, %arg2: memref<300x640xbf16, #tpu.memory_space<vmem>>, %arg3: memref<16x128xf32, #tpu.memory_space<vmem>>, %arg4: memref<1x128xf32, #tpu.memory_space<vmem>>, %arg5: memref<1x128xf32, #tpu.memory_space<vmem>>, %arg6: memref<1xf32, #tpu.memory_space<smem>>, %arg7: memref<8x128xf32, #tpu.memory_space<vmem>>) attributes {dimension_semantics = [#tpu.dimension_semantics<parallel>], iteration_bounds = array<i64: 1>, scalar_prefetch = 0 : i64, scratch_operands = 0 : i64, tpu.core_type = #tpu.core_type<tc>, window_params = [{transform_indices = @transform_0, window_bounds = array<i64: 8, 16, 300>}, {pipeline_mode = #tpu.pipeline_mode<synchronous>, transform_indices = @transform_1, window_bounds = array<i64: 300, 640>}, {pipeline_mode = #tpu.pipeline_mode<synchronous>, transform_indices = @transform_2, window_bounds = array<i64: 16, 128>}, {pipeline_mode = #tpu.pipeline_mode<synchronous>, transform_indices = @transform_3, window_bounds = array<i64: 1, 128>}, {pipeline_mode = #tpu.pipeline_mode<synchronous>, transform_indices = @transform_4, window_bounds = array<i64: 1, 128>}, {transform_indices = @transform_5, window_bounds = array<i64: 1>}, {transform_indices = @transform_6, window_bounds = array<i64: 8, 128>}]} {
    %c0 = arith.constant 0 : index
    %c0_0 = arith.constant 0 : index
    %c0_1 = arith.constant 0 : index
    %0 = vector.load %arg1[%c0, %c0_0, %c0_1] : memref<8x16x300xbf16, #tpu.memory_space<vmem>>, vector<8x16x300xbf16>
    %1 = vector.shape_cast %0 : vector<8x16x300xbf16> to vector<128x300xbf16>
    %c0_2 = arith.constant 0 : index
    %c0_3 = arith.constant 0 : index
    %2 = vector.load %arg2[%c0_2, %c0_3] : memref<300x640xbf16, #tpu.memory_space<vmem>>, vector<300x640xbf16>
    %cst = arith.constant dense<0.000000e+00> : vector<128x640xf32>
    %3 = tpu.matmul %1, %2, %cst {dimension_numbers = #tpu.dot_dimension_numbers<[1], [0], [0], [1], [0, 0, 1, 1], [], []>} : vector<128x300xbf16>, vector<300x640xbf16>, vector<128x640xf32> -> vector<128x640xf32>
    %4 = vector.extract_strided_slice %3 {offsets = [0, 0], sizes = [128, 128], strides = [1, 1]} : vector<128x640xf32> to vector<128x128xf32>
    %5 = vector.extract_strided_slice %3 {offsets = [0, 128], sizes = [128, 128], strides = [1, 1]} : vector<128x640xf32> to vector<128x128xf32>
    %c127_i32 = arith.constant 127 : i32
    %6 = tpu.dynamic_rotate %5 by %c127_i32 dim 0 : vector<128x128xf32>, i32 -> vector<128x128xf32>
    %7 = arith.addf %4, %6 : vector<128x128xf32>
    %8 = vector.extract_strided_slice %3 {offsets = [0, 256], sizes = [128, 128], strides = [1, 1]} : vector<128x640xf32> to vector<128x128xf32>
    %c126_i32 = arith.constant 126 : i32
    %9 = tpu.dynamic_rotate %8 by %c126_i32 dim 0 : vector<128x128xf32>, i32 -> vector<128x128xf32>
    %10 = arith.addf %7, %9 : vector<128x128xf32>
    %11 = vector.extract_strided_slice %3 {offsets = [0, 384], sizes = [128, 128], strides = [1, 1]} : vector<128x640xf32> to vector<128x128xf32>
    %c125_i32 = arith.constant 125 : i32
    %12 = tpu.dynamic_rotate %11 by %c125_i32 dim 0 : vector<128x128xf32>, i32 -> vector<128x128xf32>
    %13 = arith.addf %10, %12 : vector<128x128xf32>
    %14 = vector.extract_strided_slice %3 {offsets = [0, 512], sizes = [128, 128], strides = [1, 1]} : vector<128x640xf32> to vector<128x128xf32>
    %c124_i32 = arith.constant 124 : i32
    %15 = tpu.dynamic_rotate %14 by %c124_i32 dim 0 : vector<128x128xf32>, i32 -> vector<128x128xf32>
    %16 = arith.addf %13, %15 : vector<128x128xf32>
    %17 = vector.shape_cast %16 : vector<128x128xf32> to vector<8x16x128xf32>
    %c0_4 = arith.constant 0 : index
    %c0_5 = arith.constant 0 : index
    %18 = vector.load %arg3[%c0_4, %c0_5] : memref<16x128xf32, #tpu.memory_space<vmem>>, vector<16x128xf32>
    %19 = vector.shape_cast %18 : vector<16x128xf32> to vector<1x16x128xf32>
    %20 = vector.broadcast %19 : vector<1x16x128xf32> to vector<8x16x128xf32>
    %21 = arith.addf %17, %20 : vector<8x16x128xf32>
    %cst_6 = arith.constant dense<0xFF800000> : vector<8x128xf32>
    %22 = vector.multi_reduction <maximumf>, %21, %cst_6 [1] : vector<8x16x128xf32> to vector<8x128xf32>
    %c0_7 = arith.constant 0 : index
    %c0_8 = arith.constant 0 : index
    %23 = vector.load %arg4[%c0_7, %c0_8] : memref<1x128xf32, #tpu.memory_space<vmem>>, vector<1x128xf32>
    %24 = vector.broadcast %23 : vector<1x128xf32> to vector<8x128xf32>
    %25 = arith.addf %22, %24 : vector<8x128xf32>
    %cst_9 = arith.constant 0.000000e+00 : f32
    %26 = vector.broadcast %cst_9 : f32 to vector<8x128xf32>
    %27 = arith.maximumf %25, %26 : vector<8x128xf32>
    %c0_10 = arith.constant 0 : index
    %c0_11 = arith.constant 0 : index
    %28 = vector.load %arg5[%c0_10, %c0_11] : memref<1x128xf32, #tpu.memory_space<vmem>>, vector<1x128xf32>
    %29 = vector.broadcast %28 : vector<1x128xf32> to vector<8x128xf32>
    %30 = arith.mulf %27, %29 : vector<8x128xf32>
    %cst_12 = arith.constant dense<0.000000e+00> : vector<8xf32>
    %31 = vector.multi_reduction <add>, %30, %cst_12 [1] : vector<8x128xf32> to vector<8xf32>
    %32 = vector.shape_cast %31 : vector<8xf32> to vector<8x1xf32>
    %c0_13 = arith.constant 0 : index
    %33 = memref.load %arg6[%c0_13] : memref<1xf32, #tpu.memory_space<smem>>
    %34 = vector.broadcast %33 : f32 to vector<8x1xf32>
    %35 = arith.addf %32, %34 : vector<8x1xf32>
    %36 = vector.shape_cast %35 : vector<8x1xf32> to vector<8x1xf32>
    %37 = vector.broadcast %36 : vector<8x1xf32> to vector<8x128xf32>
    %c0_14 = arith.constant 0 : index
    %c0_15 = arith.constant 0 : index
    %38 = vector.load %arg7[%c0_14, %c0_15] : memref<8x128xf32, #tpu.memory_space<vmem>>, vector<8x128xf32>
    tpu.vector_store %arg7[%c0_14, %c0_15], %37 {strides = array<i32>} : memref<8x128xf32, #tpu.memory_space<vmem>>, vector<8x128xf32>,
    return
  }
  func.func @transform_0(%arg0: i32) -> (i32, i32, i32) {
    %c0_i32 = arith.constant 0 : i32
    %c0_i32_0 = arith.constant 0 : i32
    %c0_i32_1 = arith.constant 0 : i32
    return %arg0, %c0_i32, %c0_i32_0 : i32, i32, i32
  }
  func.func @transform_1(%arg0: i32) -> (i32, i32) {
    %c0_i32 = arith.constant 0 : i32
    %c0_i32_0 = arith.constant 0 : i32
    %c0_i32_1 = arith.constant 0 : i32
    return %c0_i32, %c0_i32_0 : i32, i32
  }
  func.func @transform_2(%arg0: i32) -> (i32, i32) {
    %c0_i32 = arith.constant 0 : i32
    %c0_i32_0 = arith.constant 0 : i32
    %c0_i32_1 = arith.constant 0 : i32
    return %c0_i32, %c0_i32_0 : i32, i32
  }
  func.func @transform_3(%arg0: i32) -> (i32, i32) {
    %c0_i32 = arith.constant 0 : i32
    %c0_i32_0 = arith.constant 0 : i32
    %c0_i32_1 = arith.constant 0 : i32
    return %c0_i32, %c0_i32_0 : i32, i32
  }
  func.func @transform_4(%arg0: i32) -> (i32, i32) {
    %c0_i32 = arith.constant 0 : i32
    %c0_i32_0 = arith.constant 0 : i32
    %c0_i32_1 = arith.constant 0 : i32
    return %c0_i32, %c0_i32_0 : i32, i32
  }
  func.func @transform_5(%arg0: i32) -> i32 {
    %c0_i32 = arith.constant 0 : i32
    %c0_i32_0 = arith.constant 0 : i32
    return %c0_i32 : i32
  }
  func.func @transform_6(%arg0: i32) -> (i32, i32) {
    %c0_i32 = arith.constant 0 : i32
    %c0_i32_0 = arith.constant 0 : i32
    return %arg0, %c0_i32 : i32, i32
  }
}

</mosaic_0001>

<bundles_post_ra>
// kernel: tpu_custom_call.1
= control target key start
LH: loop header
LB: loop body
LE: loop exit
PB: predicated region body
PF: predicated region fallthrough
CT: control target
= control target key end

     0   :  { %12 = vsyncpa [#allocation4], 0  ;;  %s3127_s0 = inlined_call_operand.hbm [shape: bf16[8,16,300], index: 0, kind: input, shape index: {}]   ;;  %s3128_s1 = inlined_call_operand.hbm [shape: bf16[300,640], index: 1, kind: input, shape index: {}]   ;;  %s3129_s2 = inlined_call_operand.hbm [shape: f32[16,128], index: 2, kind: input, shape index: {}]   ;;  %s3130_s3 = inlined_call_operand.vmem [shape: f32[1,128], index: 3, kind: input, shape index: {}]   ;;  %s3131_s4 = inlined_call_operand.vmem [shape: f32[1,128], index: 4, kind: input, shape index: {}]   ;;  %s3132_s5 = inlined_call_operand.<no memory space> [shape: f32[1], index: 5, kind: input, shape index: {}]   ;;  %s3133_s6 = inlined_call_operand.hbm [shape: f32[8,128], index: 6, kind: output, shape index: {}]  }
   0x1   :  { %13 = vsyncpa [#allocation7], 0 }
   0x2   :  { %14 = vsyncpa [#allocation5], 0  ;;  %s2385_s21 = smov [#allocation6]  }
   0x3   :  { %s32_s22 = sshll.u32 %s2385_s21, 4  ;;  %s33_s22 = int_to_ptr.vmem [resolvable:$true] %s32_s22 }
   0x4   :  { %s2307_s23 = scalar_lea.vmem %s33_s22, 12160  ;;  %p2312_p1 = scmp.lt.s32.totalorder %s33_s22, %s33_s22 }
   0x5   :  { %p2308_p0 = scmp.ne.s32.totalorder %s33_s22, %s2307_s23  ;;  %p2313_p2 = scmp.lt.s32.totalorder %s2307_s23, %s2307_s23 }
   0x7   :  { %p2314_p3 = por %p2313_p2, %p2312_p1 }
   0x9   :  { %p2315_p4 = pnand %p2314_p3, %p2308_p0 }
   0xb   :  { %2318 = shalt.err (!%p2315_p4)
}
   0xc   :  { %s2386_s24 = smov 320   ;;  %s2387_s25 = smov 20  }
   0xd   :  { %38 = dma.hbm_to_vmem [thread:$0]  %s3128_s1, 12160, %s33_s22, [#allocation7], %s2386_s24, %s2386_s24, %s2387_s25  }
   0xe   :  { %s2388_s28 = smov [#allocation3]  }
   0xf   :  { %s20_s29 = sshll.u32 %s2388_s28, 4  ;;  %s21_s29 = int_to_ptr.vmem [resolvable:$true] %s20_s29 }
  0x10   :  { %s2327_s30 = scalar_lea.vmem %s21_s29, 3072  ;;  %p2332_p6 = scmp.lt.s32.totalorder %s21_s29, %s21_s29 }
  0x11   :  { %p2328_p5 = scmp.ne.s32.totalorder %s21_s29, %s2327_s30  ;;  %p2333_p7 = scmp.lt.s32.totalorder %s2327_s30, %s2327_s30 }
  0x13   :  { %p2334_p8 = por %p2333_p7, %p2332_p6 }
  0x15   :  { %p2335_p9 = pnand %p2334_p8, %p2328_p5 }
  0x17   :  { %2338 = shalt.err (!%p2335_p9)
}
  0x18   :  { %s2389_s7 = smov 192   ;;  %s2390_s8 = smov 12  }
  0x19   :  { %26 = dma.hbm_to_vmem [thread:$0]  %s3127_s0, 3072, %s21_s29, [#allocation4], %s2389_s7, %s2389_s7, %s2390_s8  }
  0x1a   :  { %s2391_s11 = smov [#allocation8]  }
  0x1b   :  { %s44_s12 = sshll.u32 %s2391_s11, 4  ;;  %s45_s12 = int_to_ptr.vmem [resolvable:$true] %s44_s12 }
  0x1c   :  { %s2347_s1 = scalar_lea.vmem %s45_s12, 256  ;;  %p2352_p11 = scmp.lt.s32.totalorder %s45_s12, %s45_s12 }
  0x1d   :  { %p2348_p10 = scmp.ne.s32.totalorder %s45_s12, %s2347_s1  ;;  %p2353_p12 = scmp.lt.s32.totalorder %s2347_s1, %s2347_s1 }
  0x1f   :  { %p2354_p13 = por %p2353_p12, %p2352_p11 }
  0x21   :  { %p2355_p0 = pnand %p2354_p13, %p2348_p10 }
  0x23   :  { %2358 = shalt.err (!%p2355_p0)
}
  0x24   :  { %s2392_s13 = smov 128   ;;  %s2393_s14 = smov 8  }
  0x25   :  { %50 = dma.hbm_to_vmem [thread:$0]  %s3129_s2, 256, %s45_s12, [#allocation7], %s2392_s13, %s2392_s13, %s2393_s14  }
  0x26   :  { %2379 = dma.done.wait [#allocation4], 3072  }
  0x27   :  { %2380 = vsyncadd [#allocation4], 4294964224 }
  0x28   :  { %2381 = dma.done.wait [#allocation7], 12416  }
  0x29   :  { %2382 = vsyncadd [#allocation7], 4294954880  ;;  %v2394_v0 = vmov 0   ;;  %v2134_v1 = vld [vmem:[#allocation6 + $0x11c] ss:$20 sps:$4 sm:$0xff]   ;;  %vm847_vm0 = vcmask 1045504  }
  0x2a   :  { %1008 = vmatprep.mubr.bf16.mxu1 %v2394_v0  ;;  %v2136_v2 = vld [vmem:[#allocation6 + $0x2d4] ss:$20 sps:$4 sm:$0x3f]   ;;  %863 = vmatprep.subr.bf16.mxu0 %v2134_v1  ;;  %v2138_v3 = vld [vmem:[#allocation6 + $0x118] ss:$20 sps:$4 sm:$0xff]   ;;  %vm822_vm1 = vcmask 359424  }
  0x2b   :  { %v2139_v4 = vld [vmem:[#allocation6 + $0x2d0] ss:$20 sps:$4 sm:$0x3f]   ;;  %1990 = vmatprep.subr.msk.bf16.mxu1 %vm847_vm0, %v2136_v2  ;;  %v2140_v5 = vld [vmem:[#allocation6 + $0xf4] ss:$20 sps:$4 sm:$0xff]   ;;  %864 = vmatpush1.bf16.msra.mxu0 %v2138_v3  ;;  %vm1828_vm6 = vcmask 1041409  }
  0x2c   :  { %v849_v6 = vsel %vm847_vm0, %v2139_v4, 0  ;;  %v2142_v7 = vld [vmem:[#allocation6 + $0x2ac] ss:$20 sps:$4 sm:$0xff]   ;;  %v2144_v8 = vld [vmem:[#allocation6 + $0xf0] ss:$20 sps:$4 sm:$0xff]   ;;  %865 = vmatprep.subr.bf16.mxu0 %v2140_v5  ;;  %vm1831_vm7 = vcmask 1042434  }
  0x2d   :  { %987 = vmatpush1.bf16.msra.mxu1 %v849_v6  ;;  %v2145_v9 = vld [vmem:[#allocation6 + $0x2a8] ss:$20 sps:$4 sm:$0xff]   ;;  %v2146_v10 = vld [vmem:[#allocation6 + $0xcc] ss:$20 sps:$4 sm:$0xff]   ;;  %v2148_v11 = vld [vmem:[#allocation6 + $0x284] ss:$20 sps:$4 sm:$0xff]  }
  0x2e   :  { %988 = vmatprep.subr.bf16.mxu1 %v2142_v7  ;;  %v2150_v12 = vld [vmem:[#allocation6 + $0xc8] ss:$20 sps:$4 sm:$0xff]   ;;  %v2151_v13 = vld [vmem:[#allocation6 + $0x280] ss:$20 sps:$4 sm:$0xff]   ;;  %v2152_v14 = vld [vmem:[#allocation6 + $0xa4] ss:$20 sps:$4 sm:$0xff]  }
  0x2f   :  { %866 = vmatpush1.bf16.msra.mxu0 %v2144_v8  ;;  %v2443_v15 = vld [vmem:[#allocation3 + $0x8] ss:$12 sps:$4 sm:$0xff]   ;;  %v2157_v16 = vld [vmem:[#allocation6 + $0x124] ss:$20 sps:$4 sm:$0xff]   ;;  %v2159_v19 = vld [vmem:[#allocation6 + $0x7c] ss:$20 sps:$4 sm:$0xff]  }
  0x30   :  { %867 = vmatprep.subr.bf16.mxu0 %v2146_v10  ;;  %v2158_v17 = vld [vmem:[#allocation6 + $0xa0] ss:$20 sps:$4 sm:$0xff]   ;;  %v2163_v20 = vld [vmem:[#allocation6 + $0xfc] ss:$20 sps:$4 sm:$0xff]   ;;  %v2164_v21 = vld [vmem:[#allocation6 + $0x78] ss:$20 sps:$4 sm:$0xff]  }
  0x31   :  { %989 = vmatpush1.bf16.msra.mxu1 %v2145_v9  ;;  %v2155_v18 = vld [vmem:[#allocation6 + $0x120] ss:$20 sps:$4 sm:$0xff]   ;;  %v2161_v22 = vld [vmem:[#allocation6 + $0xf8] ss:$20 sps:$4 sm:$0xff]   ;;  %v2168_v26 = vld [vmem:[#allocation6 + $0xd0] ss:$20 sps:$4 sm:$0xff]  }
  0x32   :  { %990 = vmatprep.subr.bf16.mxu1 %v2148_v11  ;;  %v2165_v23 = vld [vmem:[#allocation6 + $0x54] ss:$20 sps:$4 sm:$0xff]   ;;  %v2448_v25 = vld [vmem:[#allocation3 + $0x20] ss:$12 sps:$4 sm:$0xff]   ;;  %v2171_v27 = vld [vmem:[#allocation6 + $0x50] ss:$20 sps:$4 sm:$0xff]  }
  0x33   :  { %868 = vmatpush1.bf16.msra.mxu0 %v2150_v12  ;;  %v2170_v24 = vld [vmem:[#allocation6 + $0xd4] ss:$20 sps:$4 sm:$0xff]   ;;  %v2172_v28 = vld [vmem:[#allocation6 + $0x2c] ss:$20 sps:$4 sm:$0xff]   ;;  %v2178_v32 = vld [vmem:[#allocation6 + $0x4] ss:$20 sps:$4 sm:$0xff]  }
  0x34   :  { %869 = vmatprep.subr.bf16.mxu0 %v2152_v14  ;;  %v2176_v29 = vld [vmem:[#allocation6 + $0xac] ss:$20 sps:$4 sm:$0xff]   ;;  %v2174_v30 = vld [vmem:[#allocation6 + $0xa8] ss:$20 sps:$4 sm:$0xff]   ;;  %v2453_v33 = vld [vmem:[#allocation3 + $0x38] ss:$12 sps:$4 sm:$0xff]  }
  0x35   :  { %991 = vmatpush1.bf16.msra.mxu1 %v2151_v13  ;;  %v2177_v31 = vld [vmem:[#allocation6 + $0x28] ss:$20 sps:$4 sm:$0xff]   ;;  %v2183_v34 = vld [vmem:[#allocation6 + $0x84] ss:$20 sps:$4 sm:$0xff]   ;;  %v2181_v35 = vld [vmem:[#allocation6 + $0x80] ss:$20 sps:$4 sm:$0xff]  }
  0x36   :  { %1089 = vmatprep.subr.bf16.mxu1 %v2157_v16  ;;  %v2184_v36 = vld [vmem:[#allocation6] ss:$20 sps:$4 sm:$0xff]   ;;  %v2185_v37 = vld [vmem:[#allocation6 + $0x25c] ss:$20 sps:$4 sm:$0xff]   ;;  %v2187_v39 = vld [vmem:[#allocation6 + $0x58] ss:$20 sps:$4 sm:$0xff]  }
  0x37   :  { %870 = vmatpush1.bf16.msra.mxu0 %v2158_v17  ;;  %v2189_v38 = vld [vmem:[#allocation6 + $0x5c] ss:$20 sps:$4 sm:$0xff]   ;;  %v2190_v40 = vld [vmem:[#allocation6 + $0x258] ss:$20 sps:$4 sm:$0xff]   ;;  %v2191_v41 = vld [vmem:[#allocation6 + $0x234] ss:$20 sps:$4 sm:$0xff]  }
  0x38   :  { %1991 = vmatmul.mubr.msk.bf16.vlgmr.msra.gmra.mxu1 %vm822_vm1, %v2443_v15  ;;  %871 = vmatprep.subr.bf16.mxu0 %v2159_v19  ;;  %v2196_v42 = vld [vmem:[#allocation6 + $0x34] ss:$20 sps:$4 sm:$0xff]   ;;  %v2458_v43 = vld [vmem:[#allocation3 + $0x50] ss:$12 sps:$4 sm:$0xff]   ;;  %v2198_v46 = vld [vmem:[#allocation6 + $0x20c] ss:$20 sps:$4 sm:$0xff]  }
  0x39   :  { %1090 = vmatpush1.bf16.msra.mxu1 %v2155_v18  ;;  %1018 = vmatprep.mubr.bf16.mxu1 %v2394_v0  ;;  %v2194_v44 = vld [vmem:[#allocation6 + $0x30] ss:$20 sps:$4 sm:$0xff]   ;;  %v2202_v47 = vld [vmem:[#allocation6 + $0xc] ss:$20 sps:$4 sm:$0xff]   ;;  %v2200_v48 = vld [vmem:[#allocation6 + $0x8] ss:$20 sps:$4 sm:$0xff]  }
  0x3a   :  { %1091 = vmatprep.subr.bf16.mxu1 %v2163_v20  ;;  %v2197_v45 = vld [vmem:[#allocation6 + $0x230] ss:$20 sps:$4 sm:$0xff]   ;;  %v2203_v49 = vld [vmem:[#allocation6 + $0x208] ss:$20 sps:$4 sm:$0xff]   ;;  %v2210_v53 = vld [vmem:[#allocation6 + $0x1e0] ss:$20 sps:$4 sm:$0xff]  }
  0x3b   :  { %872 = vmatpush1.bf16.msra.mxu0 %v2164_v21  ;;  %v2204_v50 = vld [vmem:[#allocation6 + $0x1e4] ss:$20 sps:$4 sm:$0xff]   ;;  %v2463_v52 = vld [vmem:[#allocation3 + $0x68] ss:$12 sps:$4 sm:$0xff]   ;;  %v2211_v55 = vld [vmem:[#allocation6 + $0x1bc] ss:$20 sps:$4 sm:$0xff]  }
  0x3c   :  { %873 = vmatprep.subr.bf16.mxu0 %v2165_v23  ;;  %v2209_v51 = vld [vmem:[#allocation6 + $0x264] ss:$20 sps:$4 sm:$0xff]   ;;  %v2207_v54 = vld [vmem:[#allocation6 + $0x260] ss:$20 sps:$4 sm:$0xff]   ;;  %v2215_v56 = vld [vmem:[#allocation6 + $0x23c] ss:$20 sps:$4 sm:$0xff]  }
  0x3d   :  { %1092 = vmatpush1.bf16.msra.mxu1 %v2161_v22  ;;  %v2216_v57 = vld [vmem:[#allocation6 + $0x1b8] ss:$20 sps:$4 sm:$0xff]   ;;  %v2217_v59 = vld [vmem:[#allocation6 + $0x194] ss:$20 sps:$4 sm:$0xff]   ;;  %v2468_v61 = vld [vmem:[#allocation3 + $0x4] ss:$12 sps:$4 sm:$0xff]  }
  0x3e   :  { %1093 = vmatprep.subr.bf16.mxu1 %v2170_v24  ;;  %v2213_v58 = vld [vmem:[#allocation6 + $0x238] ss:$20 sps:$4 sm:$0xff]   ;;  %v2222_v60 = vld [vmem:[#allocation6 + $0x214] ss:$20 sps:$4 sm:$0xff]   ;;  %v2223_v63 = vld [vmem:[#allocation6 + $0x190] ss:$20 sps:$4 sm:$0xff]   ;;  %895 = vmatprep.mubr.bf16.mxu0 %v2468_v61 }
  0x3f   :  { %874 = vmatpush1.bf16.msra.mxu0 %v2171_v27  ;;  %v2470_v62 = vld [vmem:[#allocation3 + $0x80] ss:$12 sps:$4 sm:$0xff]   ;;  %v2220_v1 = vld [vmem:[#allocation6 + $0x210] ss:$20 sps:$4 sm:$0xff]   ;;  %v2229_v4 = vld [vmem:[#allocation6 + $0x168] ss:$20 sps:$4 sm:$0xff]  }
  0x40   :  { %1992 = vmatmul.mubr.msk.bf16.gmra.mxu1 %vm822_vm1, %v2448_v25  ;;  %875 = vmatprep.subr.bf16.mxu0 %v2172_v28  ;;  %v2224_v2 = vld [vmem:[#allocation6 + $0x16c] ss:$20 sps:$4 sm:$0xff]   ;;  %v2226_v5 = vld [vmem:[#allocation6 + $0x1e8] ss:$20 sps:$4 sm:$0xff]   ;;  %v2230_v6 = vld [vmem:[#allocation6 + $0x144] ss:$20 sps:$4 sm:$0xff]  }
  0x41   :  { %1094 = vmatpush1.bf16.msra.mxu1 %v2168_v26  ;;  %1028 = vmatprep.mubr.bf16.mxu1 %v2394_v0  ;;  %v2228_v3 = vld [vmem:[#allocation6 + $0x1ec] ss:$20 sps:$4 sm:$0xff]   ;;  %v2476_v7 = vld [vmem:[#allocation3 + $0x98] ss:$12 sps:$4 sm:$0xff]   ;;  %v2242_v13 = vld [vmem:[#allocation6 + $0x19c] ss:$20 sps:$4 sm:$0xff]  }
  0x42   :  { %1095 = vmatprep.subr.bf16.mxu1 %v2176_v29  ;;  %v2235_v8 = vld [vmem:[#allocation6 + $0x1c4] ss:$20 sps:$4 sm:$0xff]   ;;  %v2243_v9 = vld [vmem:[#allocation6 + $0x2dc] ss:$20 sps:$4 sm:$0x3f]   ;;  %vm1834_vm8 = vcmask 1043459  }
  0x43   :  { %876 = vmatpush1.bf16.msra.mxu0 %v2177_v31  ;;  %v2245_v10 = vld [vmem:[#allocation6 + $0x2d8] ss:$20 sps:$4 sm:$0x3f]   ;;  %v2236_v11 = vld [vmem:[#allocation6 + $0x140] ss:$20 sps:$4 sm:$0xff]   ;;  %vm1837_vm9 = vcmask 1044484  }
  0x44   :  { %877 = vmatprep.subr.bf16.mxu0 %v2178_v32  ;;  %v2233_v12 = vld [vmem:[#allocation6 + $0x1c0] ss:$20 sps:$4 sm:$0xff]   ;;  %v2240_v16 = vld [vmem:[#allocation6 + $0x198] ss:$20 sps:$4 sm:$0xff]   ;;  %v855_v17 = vsel %vm847_vm0, %v2245_v10, 0  ;;  %vm1840_vm10 = vcmask 1045509  }
  0x45   :  { %1096 = vmatpush1.bf16.msra.mxu1 %v2174_v30  ;;  %v2478_v14 = vld [vmem:[#allocation3] ss:$12 sps:$4 sm:$0xff]   ;;  %v2483_v18 = vld [vmem:[#allocation3 + $0x1c] ss:$12 sps:$4 sm:$0xff]   ;;  %v2261_v22 = vld [vmem:[#allocation6 + $0x2b0] ss:$20 sps:$4 sm:$0xff]  }
  0x46   :  { %1097 = vmatprep.subr.bf16.mxu1 %v2183_v34  ;;  %v2263_v19 = vld [vmem:[#allocation6 + $0x2b4] ss:$20 sps:$4 sm:$0xff]   ;;  %v2488_v21 = vld [vmem:[#allocation3 + $0xb0] ss:$12 sps:$4 sm:$0xff]   ;;  %v2255_v24 = vld [vmem:[#allocation6 + $0x14c] ss:$20 sps:$4 sm:$0xff]  }
  0x47   :  { %878 = vmatpush1.bf16.msra.mxu0 %v2184_v36  ;;  %v2249_v20 = vld [vmem:[#allocation6 + $0x174] ss:$20 sps:$4 sm:$0xff]   ;;  %v2247_v23 = vld [vmem:[#allocation6 + $0x170] ss:$20 sps:$4 sm:$0xff]   ;;  %v2280_v30 = vld [vmem:[#allocation6 + $0x28c] ss:$20 sps:$4 sm:$0xff]  }
  0x48   :  { %1993 = vmatmul.mubr.msk.bf16.gmra.mxu1 %vm822_vm1, %v2453_v33  ;;  %879 = vmatprep.subr.bf16.mxu0 %v2185_v37  ;;  %v2491_v26 = vld [vmem:[#allocation3 + $0x18] ss:$12 sps:$4 sm:$0xff]   ;;  %v2253_v27 = vld [vmem:[#allocation6 + $0x148] ss:$20 sps:$4 sm:$0xff]   ;;  %v2495_v28 = vld [vmem:[#allocation3 + $0x34] ss:$12 sps:$4 sm:$0xff]  }
  0x49   :  { %1098 = vmatpush1.bf16.msra.mxu1 %v2181_v35  ;;  %1038 = vmatprep.mubr.bf16.mxu1 %v2394_v0  ;;  %v2278_v29 = vld [vmem:[#allocation6 + $0x288] ss:$20 sps:$4 sm:$0xff]   ;;  %v2267_v34 = vld [vmem:[#allocation6 + $0x240] ss:$20 sps:$4 sm:$0xff]   ;;  %v2502_v36 = vld [vmem:[#allocation3 + $0x4c] ss:$12 sps:$4 sm:$0xff]  }
  0x4a   :  { %1099 = vmatprep.subr.bf16.mxu1 %v2189_v38  ;;  %v2259_v31 = vld [vmem:[#allocation6 + $0x268] ss:$20 sps:$4 sm:$0xff]   ;;  %v2268_v37 = vld [vmem:[#allocation6 + $0x100] ss:$20 sps:$4 sm:$0xff]   ;;  %v2272_v38 = vld [vmem:[#allocation6 + $0x218] ss:$20 sps:$4 sm:$0xff]  }
  0x4b   :  { %880 = vmatpush2.bf16.msra.mxu0 %v2190_v40  ;;  %v2260_v32 = vld [vmem:[#allocation6 + $0x128] ss:$20 sps:$4 sm:$0xff]   ;;  %v2273_v40 = vld [vmem:[#allocation6 + $0xd8] ss:$20 sps:$4 sm:$0xff]   ;;  %vm1843_vm11 = vcmask 1046534   ;;  %vm1846_vm12 = vcmask 1047559  }
  0x4c   :  { %881 = vmatprep.subr.bf16.mxu0 %v2191_v41  ;;  %v2500_v35 = vld [vmem:[#allocation3 + $0x30] ss:$12 sps:$4 sm:$0xff]   ;;  %s2395_s19 = smov [#allocation9]  }
  0x4d   :  { %1100 = vmatpush1.bf16.msra.mxu1 %v2187_v39  ;;  %v2292_v39 = vld [vmem:[#allocation6 + $0x2e0] ss:$20 sps:$4 sm:$0x3f]   ;;  %v2277_v41 = vld [vmem:[#allocation6 + $0x1f0] ss:$20 sps:$4 sm:$0xff]   ;;  %s1861_s20 = sshll.u32 %s2395_s19, 4  ;;  %s1862_s20 = int_to_ptr.vmem [resolvable:$true] %s1861_s20 }
  0x4e   :  { %1101 = vmatprep.subr.bf16.mxu1 %v2196_v42  ;;  %v2509_v42 = vld [vmem:[#allocation3 + $0x48] ss:$12 sps:$4 sm:$0xff]   ;;  %s2359_s21 = scalar_lea.vmem %s1862_s20, 128  ;;  %p2364_p2 = scmp.lt.s32.totalorder %s1862_s20, %s1862_s20 }
  0x4f   :  { %882 = vmatpush2.bf16.msra.mxu0 %v2197_v45  ;;  %v2281_v45 = vld [vmem:[#allocation6 + $0xb0] ss:$20 sps:$4 sm:$0xff]   ;;  %p2360_p1 = scmp.ne.s32.totalorder %s1862_s20, %s2359_s21  ;;  %p2365_p3 = scmp.lt.s32.totalorder %s2359_s21, %s2359_s21 }
  0x50   :  { %1994 = vmatmul.mubr.msk.bf16.gmra.mxu1 %vm822_vm1, %v2458_v43  ;;  %883 = vmatprep.subr.bf16.mxu0 %v2198_v46  ;;  %v2285_v46 = vld [vmem:[#allocation6 + $0x1c8] ss:$20 sps:$4 sm:$0xff]  }
  0x51   :  { %1102 = vmatpush1.bf16.msra.mxu1 %v2194_v44  ;;  %1048 = vmatprep.mubr.bf16.mxu1 %v2394_v0  ;;  %v2512_v44 = vld [vmem:[#allocation3 + $0x64] ss:$12 sps:$4 sm:$0xff]   ;;  %p2366_p4 = por %p2365_p3, %p2364_p2 }
  0x52   :  { %1103 = vmatprep.subr.bf16.mxu1 %v2202_v47  ;;  %v2286_v47 = vld [vmem:[#allocation6 + $0x88] ss:$20 sps:$4 sm:$0xff]  }
  0x53   :  { %884 = vmatpush2.bf16.msra.mxu0 %v2203_v49  ;;  %v2517_v49 = vld [vmem:[#allocation3 + $0x60] ss:$12 sps:$4 sm:$0xff]   ;;  %p2367_p5 = pnand %p2366_p4, %p2360_p1 }
  0x54   :  { %885 = vmatprep.subr.bf16.mxu0 %v2204_v50  ;;  %v2520_v50 = vld [vmem:[#allocation3 + $0x7c] ss:$12 sps:$4 sm:$0xff]  }
  0x55   :  { %1104 = vmatpush1.bf16.msra.mxu1 %v2200_v48  ;;  %v2290_v48 = vld [vmem:[#allocation6 + $0x1a0] ss:$20 sps:$4 sm:$0xff]  }
  0x56   :  { %1105 = vmatprep.subr.bf16.mxu1 %v2209_v51  ;;  %v2291_v51 = vld [vmem:[#allocation6 + $0x60] ss:$20 sps:$4 sm:$0xff]  }
  0x57   :  { %886 = vmatpush2.bf16.msra.mxu0 %v2210_v53  ;;  %v2293_v53 = vld [vmem:[#allocation6 + $0x178] ss:$20 sps:$4 sm:$0xff]  }
  0x58   :  { %1995 = vmatmul.mubr.msk.bf16.gmra.mxu1 %vm822_vm1, %v2463_v52  ;;  %887 = vmatprep.subr.bf16.mxu0 %v2211_v55  ;;  %v2295_v55 = vld [vmem:[#allocation6 + $0x150] ss:$20 sps:$4 sm:$0xff]  }
  0x59   :  { %1106 = vmatpush2.bf16.msra.mxu1 %v2207_v54  ;;  %1058 = vmatprep.mubr.bf16.mxu1 %v2394_v0  ;;  %v2294_v54 = vld [vmem:[#allocation6 + $0x38] ss:$20 sps:$4 sm:$0xff]  }
  0x5a   :  { %1107 = vmatprep.subr.bf16.mxu1 %v2215_v56  ;;  %v2276_v56 = vld [vmem:[#allocation3 + $0x78] ss:$12 sps:$4 sm:$0xff]  }
  0x5b   :  { %888 = vmatpush2.bf16.msra.mxu0 %v2216_v57  ;;  %v2282_v57 = vld [vmem:[#allocation3 + $0x94] ss:$12 sps:$4 sm:$0xff]  }
  0x5c   :  { %889 = vmatprep.subr.bf16.mxu0 %v2217_v59  ;;  %v2284_v59 = vld [vmem:[#allocation3 + $0x90] ss:$12 sps:$4 sm:$0xff]  }
  0x5d   :  { %1108 = vmatpush2.bf16.msra.mxu1 %v2213_v58  ;;  %v2296_v58 = vld [vmem:[#allocation6 + $0x10] ss:$20 sps:$4 sm:$0xff]  }
  0x5e   :  { %1109 = vmatprep.subr.bf16.mxu1 %v2222_v60  ;;  %v2287_v60 = vld [vmem:[#allocation3 + $0xac] ss:$12 sps:$4 sm:$0xff]  }
  0x5f   :  { %890 = vmatpush2.bf16.msra.mxu0 %v2223_v63  ;;  %v2289_v63 = vld [vmem:[#allocation3 + $0xa8] ss:$12 sps:$4 sm:$0xff]  }
  0x60   :  { %1996 = vmatmul.mubr.msk.bf16.gmra.mxu1 %vm822_vm1, %v2470_v62  ;;  %891 = vmatprep.subr.bf16.mxu0 %v2224_v2  ;;  %v2297_v2 = vld [vmem:[#allocation6 + $0x2b8] ss:$20 sps:$4 sm:$0xff]  }
  0x61   :  { %1110 = vmatpush2.bf16.msra.mxu1 %v2220_v1  ;;  %1068 = vmatprep.mubr.bf16.mxu1 %v2394_v0  ;;  %v861_v1 = vsel %vm847_vm0, %v2292_v39, 0 }
  0x62   :  { %1111 = vmatprep.subr.bf16.mxu1 %v2228_v3  ;;  %v2298_v3 = vld [vmem:[#allocation6 + $0x290] ss:$20 sps:$4 sm:$0xff]  }
  0x63   :  { %892 = vmatpush2.bf16.msra.mxu0 %v2229_v4 }
  0x64   :  { %893 = vmatprep.subr.bf16.mxu0 %v2230_v6 }
  0x65   :  { %1112 = vmatpush2.bf16.msra.mxu1 %v2226_v5 }
  0x66   :  { %1113 = vmatprep.subr.bf16.mxu1 %v2235_v8 }
  0x67   :  { %894 = vmatpush2.bf16.msra.mxu0 %v2236_v11 }
  0x68   :  { %1997 = vmatmul.mubr.msk.bf16.gmra.mxu1 %vm822_vm1, %v2476_v7  ;;  %1999 = vmatprep.subr.msk.bf16.mxu0 %vm847_vm0, %v2243_v9 }
  0x69   :  { %1114 = vmatpush2.bf16.msra.mxu1 %v2233_v12  ;;  %1078 = vmatprep.mubr.bf16.mxu1 %v2394_v0 }
  0x6a   :  { %1115 = vmatprep.subr.bf16.mxu1 %v2242_v13  ;;  %896 = vmatmul.mubr.bf16.vlgmr.msra.gmra.mxu0 %v2478_v14 }
  0x6b   :  { %1213 = vmatpush1.bf16.msra.mxu0 %v855_v17  ;;  %905 = vmatprep.mubr.bf16.mxu0 %v2483_v18 }
  0x6c   :  { %1214 = vmatprep.subr.bf16.mxu0 %v2263_v19 }
  0x6d   :  { %1116 = vmatpush2.bf16.msra.mxu1 %v2240_v16 }
  0x6e   :  { %1117 = vmatprep.subr.bf16.mxu1 %v2249_v20 }
  0x6f   :  { %1215 = vmatpush1.bf16.msra.mxu0 %v2261_v22 }
  0x70   :  { %1998 = vmatmul.mubr.msk.bf16.gmra.mxu1 %vm822_vm1, %v2488_v21  ;;  %1216 = vmatprep.subr.bf16.mxu0 %v2280_v30 }
  0x71   :  { %1118 = vmatpush2.bf16.msra.mxu1 %v2247_v23  ;;  %1121 = vmatprep.mubr.bf16.mxu1 %v2468_v61 }
  0x72   :  { %1119 = vmatprep.subr.bf16.mxu1 %v2255_v24  ;;  %906 = vmatmul.mubr.bf16.gmra.mxu0 %v2491_v26  ;;  %v1525_v24 = vlaneseq }
  0x73   :  { %915 = vmatprep.mubr.bf16.mxu0 %v2495_v28  ;;  %1217 = vmatpush1.bf16.msra.mxu0 %v2278_v29 }
  0x74   :  { %2121 = vmatprep.subr.msk.bf16.mxu0 %vm847_vm0, %v2292_v39 }
  0x75   :  { %1120 = vmatpush2.bf16.msra.mxu1 %v2253_v27 }
  0x76   :  { %2018 = vmatprep.subr.bf16.mxu1 %v2259_v31 }
  0x78   :  { %1122 = vmatmul.mubr.bf16.vlgmr.msra.gmra.mxu1 %v2478_v14 }
  0x79   :  { %1131 = vmatprep.mubr.bf16.mxu1 %v2483_v18  ;;  %2019 = vmatpush3.bf16.msra.mxu1 %v2260_v32  ;;  %v2618_v32 = vshrl.u32 %v1525_v24, 7 }
  0x7a   :  { %2020 = vmatprep.subr.bf16.mxu1 %v2267_v34  ;;  %916 = vmatmul.mubr.bf16.gmra.mxu0 %v2500_v35 }
  0x7b   :  { %925 = vmatprep.mubr.bf16.mxu0 %v2502_v36  ;;  %vm1527_vm2 = vcmp.lt.s32.totalorder %v2618_v32, 7  ;;  %vm1576_vm3 = vcmp.lt.s32.totalorder %v2618_v32, 6  ;;  %vm1625_vm4 = vcmp.lt.s32.totalorder %v2618_v32, 5  ;;  %vm1674_vm5 = vcmp.lt.s32.totalorder %v2618_v32, 4 }
  0x7d   :  { %2021 = vmatpush3.bf16.msra.mxu1 %v2268_v37 }
  0x7e   :  { %2022 = vmatprep.subr.bf16.mxu1 %v2272_v38 }
  0x80   :  { %1132 = vmatmul.mubr.bf16.gmra.mxu1 %v2491_v26 }
  0x81   :  { %1141 = vmatprep.mubr.bf16.mxu1 %v2495_v28  ;;  %2023 = vmatpush3.bf16.msra.mxu1 %v2273_v40 }
  0x82   :  { %2024 = vmatprep.subr.bf16.mxu1 %v2277_v41  ;;  %926 = vmatmul.mubr.bf16.gmra.mxu0 %v2509_v42 }
  0x83   :  { %935 = vmatprep.mubr.bf16.mxu0 %v2512_v44 }
  0x85   :  { %2025 = vmatpush3.bf16.msra.mxu1 %v2281_v45 }
  0x86   :  { %2026 = vmatprep.subr.bf16.mxu1 %v2285_v46 }
  0x88   :  { %1142 = vmatmul.mubr.bf16.gmra.mxu1 %v2500_v35 }
  0x89   :  { %1151 = vmatprep.mubr.bf16.mxu1 %v2502_v36  ;;  %2027 = vmatpush3.bf16.msra.mxu1 %v2286_v47 }
  0x8a   :  { %2028 = vmatprep.subr.bf16.mxu1 %v2290_v48  ;;  %936 = vmatmul.mubr.bf16.gmra.mxu0 %v2517_v49 }
  0x8b   :  { %945 = vmatprep.mubr.bf16.mxu0 %v2520_v50 }
  0x8d   :  { %2029 = vmatpush3.bf16.msra.mxu1 %v2291_v51 }
  0x8e   :  { %2030 = vmatprep.subr.bf16.mxu1 %v2293_v53 }
  0x90   :  { %1152 = vmatmul.mubr.bf16.gmra.mxu1 %v2509_v42 }
  0x91   :  { %1161 = vmatprep.mubr.bf16.mxu1 %v2512_v44  ;;  %2031 = vmatpush3.bf16.msra.mxu1 %v2294_v54 }
  0x92   :  { %2032 = vmatprep.subr.bf16.mxu1 %v2295_v55  ;;  %946 = vmatmul.mubr.bf16.gmra.mxu0 %v2276_v56 }
  0x93   :  { %955 = vmatprep.mubr.bf16.mxu0 %v2282_v57 }
  0x95   :  { %2033 = vmatpush3.bf16.msra.mxu1 %v2296_v58 }
  0x96   :  { %2122 = vmatprep.subr.msk.bf16.mxu1 %vm847_vm0, %v2292_v39 }
  0x98   :  { %1162 = vmatmul.mubr.bf16.gmra.mxu1 %v2517_v49 }
  0x99   :  { %1171 = vmatprep.mubr.bf16.mxu1 %v2520_v50 }
  0x9a   :  { %956 = vmatmul.mubr.bf16.gmra.mxu0 %v2284_v59 }
  0x9b   :  { %965 = vmatprep.mubr.bf16.mxu0 %v2287_v60 }
  0xa0   :  { %1172 = vmatmul.mubr.bf16.gmra.mxu1 %v2276_v56 }
  0xa1   :  { %1181 = vmatprep.mubr.bf16.mxu1 %v2282_v57 }
  0xa2   :  { %966 = vmatmul.mubr.bf16.gmra.mxu0 %v2289_v63 }
  0xa3   :  { %1234 = vmatprep.mubr.bf16.mxu0 %v2394_v0 }
  0xa8   :  { %1182 = vmatmul.mubr.bf16.gmra.mxu1 %v2284_v59 }
  0xa9   :  { %1191 = vmatprep.mubr.bf16.mxu1 %v2287_v60 }
  0xaa   :  { %2000 = vmatmul.mubr.msk.bf16.vlgmr.msra.gmra.mxu0 %vm822_vm1, %v2443_v15 }
  0xab   :  { %2094 = vmatpush3.bf16.msra.mxu0 %v861_v1  ;;  %1244 = vmatprep.mubr.bf16.mxu0 %v2394_v0 }
  0xac   :  { %2095 = vmatprep.subr.bf16.mxu0 %v2297_v2 }
  0xaf   :  { %2096 = vmatpush3.bf16.msra.mxu0 %v2297_v2 }
  0xb0   :  { %1192 = vmatmul.mubr.bf16.gmra.mxu1 %v2289_v63  ;;  %2097 = vmatprep.subr.bf16.mxu0 %v2298_v3 }
  0xb1   :  { %1347 = vmatprep.mubr.bf16.mxu1 %v2468_v61 }
  0xb2   :  { %2001 = vmatmul.mubr.msk.bf16.gmra.mxu0 %vm822_vm1, %v2448_v25 }
  0xb3   :  { %1254 = vmatprep.mubr.bf16.mxu0 %v2394_v0  ;;  %2098 = vmatpush3.bf16.msra.mxu0 %v2298_v3 }
  0xb8   :  { %1348 = vmatmul.mubr.bf16.vlgmr.msra.gmra.mxu1 %v2478_v14 }
  0xb9   :  { %1355 = vmatprep.mubr.bf16.mxu1 %v2483_v18  ;;  %2118 = vmatpush3.bf16.msra.mxu1 %v861_v1 }
  0xba   :  { %2116 = vmatprep.subr.bf16.mxu1 %v2297_v2  ;;  %2002 = vmatmul.mubr.msk.bf16.gmra.mxu0 %vm822_vm1, %v2453_v33 }
  0xbb   :  { %1264 = vmatprep.mubr.bf16.mxu0 %v2394_v0 }
  0xbd   :  { %2119 = vmatpush3.bf16.msra.mxu1 %v2297_v2 }
  0xbe   :  { %2117 = vmatprep.subr.bf16.mxu1 %v2298_v3 }
  0xc0   :  { %1356 = vmatmul.mubr.bf16.gmra.mxu1 %v2491_v26 }
  0xc1   :  { %1363 = vmatprep.mubr.bf16.mxu1 %v2495_v28  ;;  %2120 = vmatpush3.bf16.msra.mxu1 %v2298_v3 }
  0xc2   :  { %2003 = vmatmul.mubr.msk.bf16.gmra.mxu0 %vm822_vm1, %v2458_v43 }
  0xc3   :  { %1274 = vmatprep.mubr.bf16.mxu0 %v2394_v0 }
  0xc8   :  { %1364 = vmatmul.mubr.bf16.gmra.mxu1 %v2500_v35 }
  0xc9   :  { %1371 = vmatprep.mubr.bf16.mxu1 %v2502_v36 }
  0xca   :  { %2004 = vmatmul.mubr.msk.bf16.gmra.mxu0 %vm822_vm1, %v2463_v52 }
  0xcb   :  { %1284 = vmatprep.mubr.bf16.mxu0 %v2394_v0 }
  0xd0   :  { %1372 = vmatmul.mubr.bf16.gmra.mxu1 %v2509_v42 }
  0xd1   :  { %1379 = vmatprep.mubr.bf16.mxu1 %v2512_v44 }
  0xd2   :  { %2005 = vmatmul.mubr.msk.bf16.gmra.mxu0 %vm822_vm1, %v2470_v62 }
  0xd3   :  { %1294 = vmatprep.mubr.bf16.mxu0 %v2394_v0 }
  0xd8   :  { %1380 = vmatmul.mubr.bf16.gmra.mxu1 %v2517_v49 }
  0xd9   :  { %1387 = vmatprep.mubr.bf16.mxu1 %v2520_v50 }
  0xda   :  { %2006 = vmatmul.mubr.msk.bf16.gmra.mxu0 %vm822_vm1, %v2476_v7 }
  0xdb   :  { %1304 = vmatprep.mubr.bf16.mxu0 %v2394_v0 }
  0xe0   :  { %1388 = vmatmul.mubr.bf16.gmra.mxu1 %v2276_v56 }
  0xe1   :  { %1395 = vmatprep.mubr.bf16.mxu1 %v2282_v57 }
  0xe2   :  { %2007 = vmatmul.mubr.msk.bf16.gmra.mxu0 %vm822_vm1, %v2488_v21 }
  0xe3   :  { %2099 = vmatprep.mubr.msk.bf16.mxu0 %vm822_vm1, %v2443_v15 }
  0xe8   :  { %1396 = vmatmul.mubr.bf16.gmra.mxu1 %v2284_v59 }
  0xe9   :  { %1403 = vmatprep.mubr.bf16.mxu1 %v2287_v60 }
  0xea   :  { %2100 = vmatmul.mubr.msk.bf16.vlgmr.msra.gmra.mxu0 %vm822_vm1, %v2448_v25 }
  0xeb   :  { %2103 = vmatprep.mubr.msk.bf16.mxu0 %vm822_vm1, %v2453_v33 }
  0xf0   :  { %1404 = vmatmul.mubr.bf16.gmra.mxu1 %v2289_v63 }
  0xf1   :  { %2111 = vmatprep.mubr.msk.bf16.mxu1 %vm822_vm1, %v2476_v7 }
  0xf2   :  { %2104 = vmatmul.mubr.msk.bf16.gmra.mxu0 %vm822_vm1, %v2458_v43 }
  0xf3   :  { %2107 = vmatprep.mubr.msk.bf16.mxu0 %vm822_vm1, %v2463_v52 }
  0xf8   :  { %v1010_v0 = vpop.f32.mrf.mxu1  ;;  %2112 = vmatmul.mubr.msk.bf16.vlgmr.msra.gmra.mxu1 %vm822_vm1, %v2488_v21 }
  0xfa   :  { %v1012_v15 = vpop.f32.mrf.mxu1  ;;  %2108 = vmatmul.mubr.msk.bf16.gmra.mxu0 %vm822_vm1, %v2470_v62 }
  0xfc   :  { %v1014_v25 = vpop.f32.mrf.mxu1 }
  0xfe   :  { %v1016_v33 = vpop.f32.mrf.mxu1 }
 0x100   :  { %v1020_v61 = vpop.f32.mrf.mxu1 }
 0x102   :  { %v1022_v4 = vpop.f32.mrf.mxu1 }
 0x104   :  { %v1024_v5 = vpop.f32.mrf.mxu1 }
 0x106   :  { %v1026_v6 = vpop.f32.mrf.mxu1 }
 0x108   :  { %v1030_v7 = vpop.f32.mrf.mxu1 }
 0x10a   :  { %v1032_v8 = vpop.f32.mrf.mxu1 }
 0x10c   :  { %v1034_v43 = vpop.f32.mrf.mxu1 }
 0x10e   :  { %v2582_v9 = vpop.f32.mrf.mxu1 }
 0x110   :  { %v2584_v52 = vpop.f32.mrf.mxu1 }
 0x112   :  { %v2586_v10 = vpop.f32.mrf.mxu1 }
 0x114   :  { %v2588_v11 = vpop.f32.mrf.mxu1 }
 0x116   :  { %v2590_v12 = vpop.f32.mrf.mxu1 }
 0x118   :  { %v2592_v62 = vpop.f32.mrf.mxu1 }
 0x11a   :  { %v2594_v13 = vpop.f32.mrf.mxu1 }
 0x11c   :  { %v2596_v14 = vpop.f32.mrf.mxu1 }
 0x11e   :  { %v2598_v16 = vpop.f32.mrf.mxu1 }
 0x120   :  { %v2600_v17 = vpop.f32.mrf.mxu1 }
 0x122   :  { %v2602_v18 = vpop.f32.mrf.mxu1 }
 0x124   :  { %v2604_v19 = vpop.f32.mrf.mxu1 }
 0x126   :  { %v2606_v20 = vpop.f32.mrf.mxu1 }
 0x128   :  { %v2608_v21 = vpop.f32.mrf.mxu1 }
 0x12a   :  { %v2610_v22 = vpop.f32.mrf.mxu1  ;;  %v897_v23 = vpop.f32.mrf.mxu0 }
 0x12b   :  { %v1011_v26 = vadd.f32 %v1010_v0, %v897_v23 }
 0x12c   :  { %v2612_v27 = vpop.f32.mrf.mxu1  ;;  %v899_v28 = vpop.f32.mrf.mxu0 }
 0x12d   :  { %v2614_v29 = vadd.f32 %v1012_v15, %v899_v28 }
 0x12e   :  { %v2616_v30 = vpop.f32.mrf.mxu1  ;;  %v901_v31 = vpop.f32.mrf.mxu0 }
 0x12f   :  { %v1015_v34 = vadd.f32 %v1014_v25, %v901_v31  ;;  %v1509_v40 = vrot.slane %v2614_v29, 1 }
 0x130   :  { %v2620_v35 = vpop.f32.mrf.mxu1  ;;  %v903_v36 = vpop.f32.mrf.mxu0 }
 0x131   :  { %v1017_v37 = vadd.f32 %v1016_v33, %v903_v36 }
 0x132   :  { %v2622_v38 = vpop.f32.mrf.mxu1  ;;  %v907_v39 = vpop.f32.mrf.mxu0 }
 0x133   :  { %v1510_v41 = vrot.slane %v1017_v37, 1  ;;  %v1021_v42 = vadd.f32 %v1020_v61, %v907_v39 }
 0x134   :  { %v2626_v44 = vpop.f32.mrf.mxu1  ;;  %v909_v45 = vpop.f32.mrf.mxu0 }
 0x135   :  { %v1542_v46 = vsel %vm1527_vm2, %v1509_v40, %v1510_v41  ;;  %v1023_v47 = vadd.f32 %v1022_v4, %v909_v45 }
 0x136   :  { %v2632_v48 = vpop.f32.mrf.mxu1  ;;  %v2634_v49 = vadd.f32 %v1542_v46, %v1011_v26  ;;  %v911_v50 = vpop.f32.mrf.mxu0 }
 0x137   :  { %v1511_v51 = vrot.slane %v1023_v47, 1  ;;  %v1025_v53 = vadd.f32 %v1024_v5, %v911_v50 }
 0x138   :  { %v2636_v54 = vpop.f32.mrf.mxu1  ;;  %v913_v55 = vpop.f32.mrf.mxu0 }
 0x139   :  { %v1541_v56 = vsel %vm1527_vm2, %v1510_v41, %v1511_v51  ;;  %v1027_v57 = vadd.f32 %v1026_v6, %v913_v55 }
 0x13a   :  { %v2640_v58 = vpop.f32.mrf.mxu1  ;;  %v2642_v59 = vadd.f32 %v1541_v56, %v1015_v34  ;;  %v917_v60 = vpop.f32.mrf.mxu0 }
 0x13b   :  { %v1512_v63 = vrot.slane %v1027_v57, 1  ;;  %v1031_v1 = vadd.f32 %v1030_v7, %v917_v60 }
 0x13c   :  { %v2644_v2 = vpop.f32.mrf.mxu1  ;;  %v919_v3 = vpop.f32.mrf.mxu0 }
 0x13d   :  { %v1540_v0 = vsel %vm1527_vm2, %v1511_v51, %v1512_v63  ;;  %v1033_v15 = vadd.f32 %v1032_v8, %v919_v3 }
 0x13e   :  { %v2648_v25 = vpop.f32.mrf.mxu1  ;;  %v2650_v33 = vadd.f32 %v1540_v0, %v1021_v42  ;;  %v921_v61 = vpop.f32.mrf.mxu0 }
 0x13f   :  { %v1513_v4 = vrot.slane %v1033_v15, 1  ;;  %v1035_v5 = vadd.f32 %v1034_v43, %v921_v61 }
 0x140   :  { %v2652_v6 = vpop.f32.mrf.mxu1  ;;  %v923_v23 = vpop.f32.mrf.mxu0 }
 0x141   :  { %v1539_v7 = vsel %vm1527_vm2, %v1512_v63, %v1513_v4  ;;  %v1037_v24 = vadd.f32 %v2582_v9, %v923_v23 }
 0x142   :  { %v2657_v26 = vpop.f32.mrf.mxu1  ;;  %v2659_v28 = vadd.f32 %v1539_v7, %v1025_v53  ;;  %v927_v8 = vpop.f32.mrf.mxu0 }
 0x143   :  { %v1514_v31 = vrot.slane %v1037_v24, 1  ;;  %v1041_v34 = vadd.f32 %v2584_v52, %v927_v8 }
 0x144   :  { %v2662_v36 = vpop.f32.mrf.mxu1  ;;  %v929_v37 = vpop.f32.mrf.mxu0 }
 0x145   :  { %v1538_v43 = vsel %vm1527_vm2, %v1513_v4, %v1514_v31  ;;  %v1043_v39 = vadd.f32 %v2586_v10, %v929_v37 }
 0x146   :  { %v2667_v41 = vpop.f32.mrf.mxu1  ;;  %v2669_v42 = vadd.f32 %v1538_v43, %v1031_v1  ;;  %v931_v9 = vpop.f32.mrf.mxu0 }
 0x147   :  { %v1515_v45 = vrot.slane %v1043_v39, 1  ;;  %v1045_v46 = vadd.f32 %v2588_v11, %v931_v9 }
 0x148   :  { %v2672_v47 = vpop.f32.mrf.mxu1  ;;  %v933_v50 = vpop.f32.mrf.mxu0 }
 0x149   :  { %v1537_v52 = vsel %vm1527_vm2, %v1514_v31, %v1515_v45  ;;  %v1047_v51 = vadd.f32 %v2590_v12, %v933_v50 }
 0x14a   :  { %v2677_v53 = vpop.f32.mrf.mxu1  ;;  %v2679_v55 = vadd.f32 %v1537_v52, %v1035_v5  ;;  %v937_v10 = vpop.f32.mrf.mxu0 }
 0x14b   :  { %v1516_v56 = vrot.slane %v1047_v51, 1  ;;  %v1051_v57 = vadd.f32 %v2592_v62, %v937_v10 }
 0x14c   :  { %v2682_v60 = vpop.f32.mrf.mxu1  ;;  %v939_v63 = vpop.f32.mrf.mxu0 }
 0x14d   :  { %v1536_v11 = vsel %vm1527_vm2, %v1515_v45, %v1516_v56  ;;  %v1053_v1 = vadd.f32 %v2594_v13, %v939_v63 }
 0x14e   :  { %v2687_v3 = vpop.f32.mrf.mxu1  ;;  %v2689_v0 = vadd.f32 %v1536_v11, %v1041_v34  ;;  %v941_v12 = vpop.f32.mrf.mxu0 }
 0x14f   :  { %v1517_v15 = vrot.slane %v1053_v1, 1  ;;  %v1055_v61 = vadd.f32 %v2596_v14, %v941_v12 }
 0x150   :  { %v2692_v4 = vpop.f32.mrf.mxu1  ;;  %v943_v5 = vpop.f32.mrf.mxu0 }
 0x151   :  { %v1535_v62 = vsel %vm1527_vm2, %v1516_v56, %v1517_v15  ;;  %v1057_v23 = vadd.f32 %v2598_v16, %v943_v5 }
 0x152   :  { %v2697_v7 = vpop.f32.mrf.mxu1  ;;  %v2699_v24 = vadd.f32 %v1535_v62, %v1045_v46  ;;  %v947_v13 = vpop.f32.mrf.mxu0 }
 0x153   :  { %v1518_v8 = vrot.slane %v1057_v23, 1  ;;  %v1061_v31 = vadd.f32 %v2600_v17, %v947_v13 }
 0x154   :  { %v2702_v34 = vpop.f32.mrf.mxu1  ;;  %v949_v37 = vpop.f32.mrf.mxu0 }
 0x155   :  { %v1534_v14 = vsel %vm1527_vm2, %v1517_v15, %v1518_v8  ;;  %v1063_v43 = vadd.f32 %v2602_v18, %v949_v37 }
 0x156   :  { %v2707_v39 = vpop.f32.mrf.mxu1  ;;  %v2709_v9 = vadd.f32 %v1534_v14, %v1051_v57  ;;  %v951_v16 = vpop.f32.mrf.mxu0 }
 0x157   :  { %v1519_v45 = vrot.slane %v1063_v43, 1  ;;  %v1065_v46 = vadd.f32 %v2604_v19, %v951_v16 }
 0x158   :  { %v2712_v50 = vpop.f32.mrf.mxu1  ;;  %v953_v52 = vpop.f32.mrf.mxu0 }
 0x159   :  { %v1533_v17 = vsel %vm1527_vm2, %v1518_v8, %v1519_v45  ;;  %v1067_v51 = vadd.f32 %v2606_v20, %v953_v52 }
 0x15a   :  { %v2717_v10 = vpop.f32.mrf.mxu1  ;;  %v2719_v56 = vadd.f32 %v1533_v17, %v1055_v61  ;;  %v957_v18 = vpop.f32.mrf.mxu0 }
 0x15b   :  { %v1520_v63 = vrot.slane %v1067_v51, 1  ;;  %v1071_v57 = vadd.f32 %v2608_v21, %v957_v18 }
 0x15c   :  { %v2722_v11 = vpop.f32.mrf.mxu1  ;;  %v959_v1 = vpop.f32.mrf.mxu0 }
 0x15d   :  { %v1532_v19 = vsel %vm1527_vm2, %v1519_v45, %v1520_v63  ;;  %v1073_v12 = vadd.f32 %v2610_v22, %v959_v1 }
 0x15e   :  { %v2727_v15 = vpop.f32.mrf.mxu1  ;;  %v2729_v5 = vadd.f32 %v1532_v19, %v1061_v31  ;;  %v961_v20 = vpop.f32.mrf.mxu0 }
 0x15f   :  { %v1521_v62 = vrot.slane %v1073_v12, 1  ;;  %v1075_v61 = vadd.f32 %v2612_v27, %v961_v20 }
 0x160   :  { %v2732_v23 = vpop.f32.mrf.mxu1  ;;  %v963_v13 = vpop.f32.mrf.mxu0 }
 0x161   :  { %v1531_v21 = vsel %vm1527_vm2, %v1520_v63, %v1521_v62  ;;  %v1077_v8 = vadd.f32 %v2616_v30, %v963_v13 }
 0x162   :  { %v2737_v37 = vpop.f32.mrf.mxu1  ;;  %v2739_v14 = vadd.f32 %v1531_v21, %v1065_v46  ;;  %v967_v22 = vpop.f32.mrf.mxu0 }
 0x163   :  { %v1522_v43 = vrot.slane %v1077_v8, 1  ;;  %v1081_v31 = vadd.f32 %v2620_v35, %v967_v22 }
 0x164   :  { %v2742_v16 = vpop.f32.mrf.mxu1  ;;  %v969_v45 = vpop.f32.mrf.mxu0 }
 0x165   :  { %v1530_v27 = vsel %vm1527_vm2, %v1521_v62, %v1522_v43  ;;  %v1083_v52 = vadd.f32 %v2622_v38, %v969_v45 }
 0x166   :  { %v2747_v17 = vpop.f32.mrf.mxu1  ;;  %v2749_v51 = vadd.f32 %v1530_v27, %v1071_v57  ;;  %v971_v30 = vpop.f32.mrf.mxu0 }
 0x167   :  { %v1523_v18 = vrot.slane %v1083_v52, 1  ;;  %v1085_v46 = vadd.f32 %v2626_v44, %v971_v30 }
 0x168   :  { %v2752_v63 = vpop.f32.mrf.mxu1  ;;  %v973_v1 = vpop.f32.mrf.mxu0 }
 0x169   :  { %v1529_v35 = vsel %vm1527_vm2, %v1522_v43, %v1523_v18  ;;  %v1087_v19 = vadd.f32 %v2632_v48, %v973_v1 }
 0x16a   :  { %v2757_v12 = vpop.f32.mrf.mxu1  ;;  %v2759_v20 = vadd.f32 %v1529_v35, %v1075_v61  ;;  %v1236_v38 = vpop.f32.mrf.mxu0 }
 0x16b   :  { %v1524_v62 = vrot.slane %v1087_v19, 1  ;;  %v2764_v13 = vadd.f32 %v1236_v38, %v2636_v54 }
 0x16c   :  { %v2761_v57 = vpop.f32.mrf.mxu1  ;;  %v1238_v44 = vpop.f32.mrf.mxu0 }
 0x16d   :  { %v1528_v21 = vsel %vm1527_vm2, %v1523_v18, %v1524_v62  ;;  %v1543_v48 = vsel %vm1527_vm2, %v1524_v62, %v1509_v40  ;;  %v2775_v61 = vadd.f32 %v1238_v44, %v2640_v58  ;;  %v1560_v52 = vrot.slane %v2764_v13, 2 }
 0x16e   :  { %v2772_v8 = vpop.f32.mrf.mxu1  ;;  %v2777_v22 = vadd.f32 %v1528_v21, %v1081_v31  ;;  %v2779_v43 = vadd.f32 %v1543_v48, %v1085_v46  ;;  %v1240_v54 = vpop.f32.mrf.mxu0 }
 0x16f   :  { %v1241_v27 = vadd.f32 %v1240_v54, %v2644_v2  ;;  %v1609_v18 = vrot.slane %v2775_v61, 3 }
 0x170   :  { %v2781_v45 = vpop.f32.mrf.mxu1  ;;  %v1242_v29 = vpop.f32.mrf.mxu0 }
 0x171   :  { %v1561_v40 = vrot.slane %v1241_v27, 2  ;;  %v1243_v58 = vadd.f32 %v1242_v29, %v2648_v25 }
 0x172   :  { %v2786_v30 = vpop.f32.mrf.mxu1  ;;  %v1246_v31 = vpop.f32.mrf.mxu0 }
 0x173   :  { %v1591_v2 = vsel %vm1576_vm3, %v1560_v52, %v1561_v40  ;;  %v1610_v46 = vrot.slane %v1243_v58, 3  ;;  %v1247_v35 = vadd.f32 %v1246_v31, %v2652_v6 }
 0x174   :  { %v2795_v1 = vpop.f32.mrf.mxu1  ;;  %v1593_v19 = vadd.f32 %v1591_v2, %v2634_v49  ;;  %v1248_v38 = vpop.f32.mrf.mxu0 }
 0x175   :  { %v1640_v25 = vsel %vm1625_vm4, %v1609_v18, %v1610_v46  ;;  %v1562_v62 = vrot.slane %v1247_v35, 2  ;;  %v1249_v21 = vadd.f32 %v1248_v38, %v2657_v26 }
 0x176   :  { %v2803_v44 = vpop.f32.mrf.mxu1  ;;  %v2806_v48 = vadd.f32 %v1640_v25, %v1593_v19  ;;  %v1250_v54 = vpop.f32.mrf.mxu0 }
 0x177   :  { %v1590_v27 = vsel %vm1576_vm3, %v1561_v40, %v1562_v62  ;;  %v1611_v6 = vrot.slane %v1249_v21, 3  ;;  %v1251_v49 = vadd.f32 %v1250_v54, %v2662_v36 }
 0x178   :  { %v2811_v29 = vpop.f32.mrf.mxu1  ;;  %v1594_v58 = vadd.f32 %v1590_v27, %v2642_v59  ;;  %v1252_v31 = vpop.f32.mrf.mxu0 }
 0x179   :  { %v1639_v2 = vsel %vm1625_vm4, %v1610_v46, %v1611_v6  ;;  %v1563_v35 = vrot.slane %v1251_v49, 2  ;;  %v1253_v26 = vadd.f32 %v1252_v31, %v2667_v41 }
 0x17a   :  { %v2817_v19 = vpop.f32.mrf.mxu1  ;;  %v2819_v38 = vadd.f32 %v1639_v2, %v1594_v58  ;;  %v1256_v25 = vpop.f32.mrf.mxu0 }
 0x17b   :  { %v1589_v40 = vsel %vm1576_vm3, %v1562_v62, %v1563_v35  ;;  %v1612_v36 = vrot.slane %v1253_v26, 3  ;;  %v1257_v21 = vadd.f32 %v1256_v25, %v2672_v47 }
 0x17c   :  { %v2824_v54 = vpop.f32.mrf.mxu1  ;;  %v1595_v59 = vadd.f32 %v1589_v40, %v2650_v33  ;;  %v1258_v27 = vpop.f32.mrf.mxu0 }
 0x17d   :  { %v1638_v46 = vsel %vm1625_vm4, %v1611_v6, %v1612_v36  ;;  %v1564_v41 = vrot.slane %v1257_v21, 2  ;;  %v1259_v49 = vadd.f32 %v1258_v27, %v2677_v53 }
 0x17e   :  { %v2830_v58 = vpop.f32.mrf.mxu1  ;;  %v2832_v31 = vadd.f32 %v1638_v46, %v1595_v59  ;;  %v1260_v2 = vpop.f32.mrf.mxu0 }
 0x17f   :  { %v1588_v62 = vsel %vm1576_vm3, %v1563_v35, %v1564_v41  ;;  %v1613_v47 = vrot.slane %v1259_v49, 3  ;;  %v1261_v26 = vadd.f32 %v1260_v2, %v2682_v60 }
 0x180   :  { %v2837_v25 = vpop.f32.mrf.mxu1  ;;  %v1596_v33 = vadd.f32 %v1588_v62, %v2659_v28  ;;  %v1262_v40 = vpop.f32.mrf.mxu0 }
 0x181   :  { %v1637_v6 = vsel %vm1625_vm4, %v1612_v36, %v1613_v47  ;;  %v1565_v53 = vrot.slane %v1261_v26, 2  ;;  %v1263_v21 = vadd.f32 %v1262_v40, %v2687_v3 }
 0x182   :  { %v2843_v59 = vpop.f32.mrf.mxu1  ;;  %v2845_v27 = vadd.f32 %v1637_v6, %v1596_v33  ;;  %v1266_v46 = vpop.f32.mrf.mxu0 }
 0x183   :  { %v1587_v35 = vsel %vm1576_vm3, %v1564_v41, %v1565_v53  ;;  %v1614_v60 = vrot.slane %v1263_v21, 3  ;;  %v1267_v49 = vadd.f32 %v1266_v46, %v2692_v4 }
 0x184   :  { %v2850_v2 = vpop.f32.mrf.mxu1  ;;  %v1597_v28 = vadd.f32 %v1587_v35, %v2669_v42  ;;  %v1268_v62 = vpop.f32.mrf.mxu0 }
 0x185   :  { %v1636_v36 = vsel %vm1625_vm4, %v1613_v47, %v1614_v60  ;;  %v1566_v3 = vrot.slane %v1267_v49, 2  ;;  %v1269_v26 = vadd.f32 %v1268_v62, %v2697_v7 }
 0x186   :  { %v2856_v33 = vpop.f32.mrf.mxu1  ;;  %v2858_v40 = vadd.f32 %v1636_v36, %v1597_v28  ;;  %v1270_v6 = vpop.f32.mrf.mxu0 }
 0x187   :  { %v1586_v41 = vsel %vm1576_vm3, %v1565_v53, %v1566_v3  ;;  %v1615_v4 = vrot.slane %v1269_v26, 3  ;;  %v1271_v21 = vadd.f32 %v1270_v6, %v2702_v34 }
 0x188   :  { %v2863_v46 = vpop.f32.mrf.mxu1  ;;  %v1598_v42 = vadd.f32 %v1586_v41, %v2679_v55  ;;  %v1272_v35 = vpop.f32.mrf.mxu0 }
 0x189   :  { %v1635_v47 = vsel %vm1625_vm4, %v1614_v60, %v1615_v4  ;;  %v1567_v7 = vrot.slane %v1271_v21, 2  ;;  %v1273_v49 = vadd.f32 %v1272_v35, %v2707_v39 }
 0x18a   :  { %v2869_v28 = vpop.f32.mrf.mxu1  ;;  %v2871_v62 = vadd.f32 %v1635_v47, %v1598_v42  ;;  %v1276_v36 = vpop.f32.mrf.mxu0 }
 0x18b   :  { %v1585_v53 = vsel %vm1576_vm3, %v1566_v3, %v1567_v7  ;;  %v1616_v34 = vrot.slane %v1273_v49, 3  ;;  %v1277_v26 = vadd.f32 %v1276_v36, %v2712_v50 }
 0x18c   :  { %v2876_v6 = vpop.f32.mrf.mxu1  ;;  %v1599_v55 = vadd.f32 %v1585_v53, %v2689_v0  ;;  %v1278_v41 = vpop.f32.mrf.mxu0 }
 0x18d   :  { %v1634_v60 = vsel %vm1625_vm4, %v1615_v4, %v1616_v34  ;;  %v1568_v39 = vrot.slane %v1277_v26, 2  ;;  %v1279_v21 = vadd.f32 %v1278_v41, %v2717_v10 }
 0x18e   :  { %v2882_v42 = vpop.f32.mrf.mxu1  ;;  %v2884_v35 = vadd.f32 %v1634_v60, %v1599_v55  ;;  %v1280_v47 = vpop.f32.mrf.mxu0 }
 0x18f   :  { %v1584_v3 = vsel %vm1576_vm3, %v1567_v7, %v1568_v39  ;;  %v1617_v50 = vrot.slane %v1279_v21, 3  ;;  %v1281_v49 = vadd.f32 %v1280_v47, %v2722_v11 }
 0x190   :  { %v2889_v36 = vpop.f32.mrf.mxu1  ;;  %v1600_v0 = vadd.f32 %v1584_v3, %v2699_v24  ;;  %v1282_v53 = vpop.f32.mrf.mxu0 }
 0x191   :  { %v1633_v4 = vsel %vm1625_vm4, %v1616_v34, %v1617_v50  ;;  %v1569_v10 = vrot.slane %v1281_v49, 2  ;;  %v1283_v26 = vadd.f32 %v1282_v53, %v2727_v15 }
 0x192   :  { %v2895_v55 = vpop.f32.mrf.mxu1  ;;  %v2897_v41 = vadd.f32 %v1633_v4, %v1600_v0  ;;  %v1286_v60 = vpop.f32.mrf.mxu0 }
 0x193   :  { %v1583_v7 = vsel %vm1576_vm3, %v1568_v39, %v1569_v10  ;;  %v1618_v11 = vrot.slane %v1283_v26, 3  ;;  %v1287_v21 = vadd.f32 %v1286_v60, %v2732_v23 }
 0x194   :  { %v2902_v47 = vpop.f32.mrf.mxu1  ;;  %v1601_v24 = vadd.f32 %v1583_v7, %v2709_v9  ;;  %v1288_v3 = vpop.f32.mrf.mxu0 }
 0x195   :  { %v1632_v34 = vsel %vm1625_vm4, %v1617_v50, %v1618_v11  ;;  %v1570_v15 = vrot.slane %v1287_v21, 2  ;;  %v1289_v49 = vadd.f32 %v1288_v3, %v2737_v37 }
 0x196   :  { %v2908_v0 = vpop.f32.mrf.mxu1  ;;  %v2910_v53 = vadd.f32 %v1632_v34, %v1601_v24  ;;  %v1290_v4 = vpop.f32.mrf.mxu0 }
 0x197   :  { %v1582_v39 = vsel %vm1576_vm3, %v1569_v10, %v1570_v15  ;;  %v1619_v23 = vrot.slane %v1289_v49, 3  ;;  %v1291_v26 = vadd.f32 %v1290_v4, %v2742_v16 }
 0x198   :  { %v2915_v60 = vpop.f32.mrf.mxu1  ;;  %v1602_v9 = vadd.f32 %v1582_v39, %v2719_v56  ;;  %v1292_v7 = vpop.f32.mrf.mxu0 }
 0x199   :  { %v1631_v50 = vsel %vm1625_vm4, %v1618_v11, %v1619_v23  ;;  %v1571_v37 = vrot.slane %v1291_v26, 2  ;;  %v1293_v21 = vadd.f32 %v1292_v7, %v2747_v17 }
 0x19a   :  { %v2921_v24 = vpop.f32.mrf.mxu1  ;;  %v2923_v3 = vadd.f32 %v1631_v50, %v1602_v9  ;;  %v1296_v34 = vpop.f32.mrf.mxu0 }
 0x19b   :  { %v1581_v10 = vsel %vm1576_vm3, %v1570_v15, %v1571_v37  ;;  %v1620_v16 = vrot.slane %v1293_v21, 3  ;;  %v1297_v49 = vadd.f32 %v1296_v34, %v2752_v63 }
 0x19c   :  { %v2928_v4 = vpop.f32.mrf.mxu1  ;;  %v1603_v56 = vadd.f32 %v1581_v10, %v2729_v5  ;;  %v1298_v39 = vpop.f32.mrf.mxu0 }
 0x19d   :  { %v1630_v11 = vsel %vm1625_vm4, %v1619_v23, %v1620_v16  ;;  %v1572_v17 = vrot.slane %v1297_v49, 2  ;;  %v1299_v26 = vadd.f32 %v1298_v39, %v2757_v12 }
 0x19e   :  { %v2934_v9 = vpop.f32.mrf.mxu1  ;;  %v2936_v7 = vadd.f32 %v1630_v11, %v1603_v56  ;;  %v1300_v50 = vpop.f32.mrf.mxu0 }
 0x19f   :  { %v1580_v15 = vsel %vm1576_vm3, %v1571_v37, %v1572_v17  ;;  %v1621_v63 = vrot.slane %v1299_v26, 3  ;;  %v1301_v21 = vadd.f32 %v1300_v50, %v2761_v57 }
 0x1a0   :  { %v2941_v34 = vpop.f32.mrf.mxu1  ;;  %v1604_v5 = vadd.f32 %v1580_v15, %v2739_v14  ;;  %v1302_v10 = vpop.f32.mrf.mxu0 }
 0x1a1   :  { %v1629_v23 = vsel %vm1625_vm4, %v1620_v16, %v1621_v63  ;;  %v1573_v12 = vrot.slane %v1301_v21, 2  ;;  %v1303_v49 = vadd.f32 %v1302_v10, %v2772_v8 }
 0x1a2   :  { %v2947_v56 = vpop.f32.mrf.mxu1  ;;  %v2949_v39 = vadd.f32 %v1629_v23, %v1604_v5  ;;  %v1306_v11 = vpop.f32.mrf.mxu0 }
 0x1a3   :  { %v1579_v37 = vsel %vm1576_vm3, %v1572_v17, %v1573_v12  ;;  %v1622_v57 = vrot.slane %v1303_v49, 3  ;;  %v1307_v26 = vadd.f32 %v1306_v11, %v2781_v45 }
 0x1a4   :  { %v2954_v50 = vpop.f32.mrf.mxu1  ;;  %v1605_v14 = vadd.f32 %v1579_v37, %v2749_v51  ;;  %v1308_v15 = vpop.f32.mrf.mxu0 }
 0x1a5   :  { %v1628_v16 = vsel %vm1625_vm4, %v1621_v63, %v1622_v57  ;;  %v1574_v8 = vrot.slane %v1307_v26, 2  ;;  %v1309_v21 = vadd.f32 %v1308_v15, %v2786_v30 }
 0x1a6   :  { %v2960_v5 = vpop.f32.mrf.mxu1  ;;  %v2962_v10 = vadd.f32 %v1628_v16, %v1605_v14  ;;  %v1310_v23 = vpop.f32.mrf.mxu0 }
 0x1a7   :  { %v1578_v17 = vsel %vm1576_vm3, %v1573_v12, %v1574_v8  ;;  %v1623_v45 = vrot.slane %v1309_v21, 3  ;;  %v1311_v49 = vadd.f32 %v1310_v23, %v2795_v1  ;;  %v2042_v12 = vadd.f32 %v2843_v59, %v2837_v25 }
 0x1a8   :  { %v2070_v11 = vpop.f32.mrf.mxu1  ;;  %v1606_v51 = vadd.f32 %v1578_v17, %v2759_v20  ;;  %v1312_v37 = vpop.f32.mrf.mxu0  ;;  %v2045_v25 = vadd.f32 %v2856_v33, %v2850_v2 }
 0x1a9   :  { %v1627_v63 = vsel %vm1625_vm4, %v1622_v57, %v1623_v45  ;;  %v1575_v26 = vrot.slane %v1311_v49, 2  ;;  %v1313_v30 = vadd.f32 %v1312_v37, %v2803_v44  ;;  %v2036_v44 = vadd.f32 %v2817_v19, %v2811_v29 }
 0x1aa   :  { %v2071_v15 = vpop.f32.mrf.mxu1  ;;  %v2971_v14 = vadd.f32 %v1627_v63, %v1606_v51  ;;  %v2101_v16 = vpop.f32.mrf.mxu0 }
 0x1ab   :  { %v1577_v1 = vsel %vm1576_vm3, %v1574_v8, %v1575_v26  ;;  %v1592_v20 = vsel %vm1576_vm3, %v1575_v26, %v1560_v52  ;;  %v1624_v21 = vrot.slane %v1313_v30, 3  ;;  %v1455_v52 = vadd.f32 %v2101_v16, %v2042_v12 }
 0x1ac   :  { %v2073_v57 = vpop.f32.mrf.mxu1  ;;  %v1607_v23 = vadd.f32 %v1577_v1, %v2777_v22  ;;  %v1608_v17 = vadd.f32 %v1592_v20, %v2779_v43  ;;  %v1446_v49 = vpop.f32.mrf.mxu0  ;;  %v2039_v43 = vadd.f32 %v2830_v58, %v2824_v54  ;;  %v2048_v26 = vadd.f32 %v2869_v28, %v2863_v46 }
 0x1ad   :  { %v1626_v59 = vsel %vm1625_vm4, %v1623_v45, %v1624_v21  ;;  %v1641_v13 = vsel %vm1625_vm4, %v1624_v21, %v1609_v18  ;;  %v2999_v19 = vadd.f32 %v2036_v44, %v1446_v49  ;;  %v1660_v45 = vrot.slane %v1455_v52, 4 }
 0x1ae   :  { %v2074_v8 = vpop.f32.mrf.mxu1  ;;  %v2993_v51 = vadd.f32 %v1626_v59, %v1607_v23  ;;  %v2995_v29 = vadd.f32 %v1641_v13, %v1608_v17  ;;  %v2102_v22 = vpop.f32.mrf.mxu0  ;;  %v2054_v16 = vadd.f32 %v2895_v55, %v2889_v36  ;;  %v2051_v20 = vadd.f32 %v2882_v42, %v2876_v6  ;;  %v3021_v23 = vld [vmem:[#allocation8 + $0x8] sm:$0xff]  ;;  %v3030_v13 = vld [vmem:[#allocation8] sm:$0xff] }
 0x1af   :  { %v1458_v33 = vadd.f32 %v2102_v22, %v2045_v25  ;;  %v1658_v54 = vrot.slane %v2999_v19, 4  ;;  %v2057_v21 = vadd.f32 %v2908_v0, %v2902_v47  ;;  %v2060_v46 = vadd.f32 %v2921_v24, %v2915_v60 }
 0x1b0   :  { %v2076_v2 = vpop.f32.mrf.mxu1  ;;  %v1449_v61 = vpop.f32.mrf.mxu0  ;;  %v2066_v47 = vadd.f32 %v2947_v56, %v2941_v34  ;;  %v2069_v25 = vadd.f32 %v2960_v5, %v2954_v50  ;;  %v2072_v59 = vadd.f32 %v2071_v15, %v2070_v11 }
 0x1b1   :  { %v1661_v37 = vrot.slane %v1458_v33, 4  ;;  %v1450_v63 = vadd.f32 %v2039_v43, %v1449_v61 }
 0x1b2   :  { %v2077_v18 = vpop.f32.mrf.mxu1  ;;  %v2105_v30 = vpop.f32.mrf.mxu0 }
 0x1b3   :  { %v1687_v58 = vsel %vm1674_vm5, %v1660_v45, %v1661_v37  ;;  %v1659_v12 = vrot.slane %v1450_v63, 4  ;;  %v2078_v28 = vadd.f32 %v2077_v18, %v2076_v2  ;;  %v1471_v17 = vadd.f32 %v2105_v30, %v2054_v16 }
 0x1b4   :  { %v2079_v1 = vpop.f32.mrf.mxu1  ;;  %v1462_v44 = vpop.f32.mrf.mxu0  ;;  %v1693_v0 = vadd.f32 %v1687_v58, %v2832_v31  ;;  %v2075_v2 = vadd.f32 %v2074_v8, %v2073_v57 }
 0x1b5   :  { %v1688_v36 = vsel %vm1674_vm5, %v1659_v12, %v1660_v45  ;;  %v1689_v55 = vsel %vm1674_vm5, %v1658_v54, %v1659_v12  ;;  %v1463_v42 = vadd.f32 %v2048_v26, %v1462_v44 }
 0x1b6   :  { %v2080_v6 = vpop.f32.mrf.mxu1  ;;  %v1691_v60 = vadd.f32 %v1689_v55, %v2806_v48  ;;  %v1692_v24 = vadd.f32 %v1688_v36, %v2819_v38  ;;  %v2106_v49 = vpop.f32.mrf.mxu0  ;;  %v1664_v48 = vrot.slane %v1471_v17, 4  ;;  %v1711_v5 = vadd.f32 %v3030_v13, %v1693_v0 }
 0x1b7   :  { %v1662_v52 = vrot.slane %v1463_v42, 4  ;;  %v1474_v22 = vadd.f32 %v2106_v49, %v2057_v21  ;;  %v2081_v8 = vadd.f32 %v2080_v6, %v2079_v1 }
 0x1b8   :  { %v2113_v43 = vpop.f32.mrf.mxu1  ;;  %v1709_v33 = vadd.f32 %v3030_v13, %v1691_v60  ;;  %v1710_v34 = vadd.f32 %v3021_v23, %v1692_v24  ;;  %v1465_v56 = vpop.f32.mrf.mxu0 }
 0x1b9   :  { %v1503_v31 = vadd.f32 %v2113_v43, %v2078_v28  ;;  %v1686_v38 = vsel %vm1674_vm5, %v1661_v37, %v1662_v52  ;;  %v1665_v61 = vrot.slane %v1474_v22, 4  ;;  %v1466_v45 = vadd.f32 %v2051_v20, %v1465_v56 }
 0x1ba   :  { %v1494_v50 = vpop.f32.mrf.mxu1  ;;  %v1725_v11 = vmax.f32 %v1709_v33, %v1710_v34  ;;  %v1694_v15 = vadd.f32 %v1686_v38, %v2845_v27  ;;  %v2109_v57 = vpop.f32.mrf.mxu0 }
 0x1bb   :  { %v3038_v18 = vadd.f32 %v2072_v59, %v1494_v50  ;;  %v1683_v63 = vsel %vm1674_vm5, %v1664_v48, %v1665_v61  ;;  %v1663_v26 = vrot.slane %v1466_v45, 4  ;;  %v3042_v30 = vadd.f32 %v2109_v57, %v2066_v47 }
 0x1bc   :  { %v2114_v16 = vpop.f32.mrf.mxu1  ;;  %v1726_v37 = vrot.slane %v1725_v11, 4  ;;  %v1712_v58 = vadd.f32 %v3021_v23, %v1694_v15  ;;  %v1697_v12 = vadd.f32 %v1683_v63, %v2884_v35  ;;  %v1672_v20 = vrot.slane %v1503_v31, 4  ;;  %v1478_v21 = vpop.f32.mrf.mxu0 }
 0x1bd   :  { %v1684_v27 = vsel %vm1674_vm5, %v1663_v26, %v1664_v48  ;;  %v1685_v1 = vsel %vm1674_vm5, %v1662_v52, %v1663_v26  ;;  %v1670_v28 = vrot.slane %v3038_v18, 4  ;;  %v1506_v44 = vadd.f32 %v2114_v16, %v2081_v8  ;;  %v3080_v8 = vld [vmem:[%s3130_s3] ss:$0 sm:$0xff] }
 0x1be   :  { %v1497_v36 = vpop.f32.mrf.mxu1  ;;  %v1727_v55 = vmax.f32 %v1725_v11, %v1726_v37  ;;  %v1732_v17 = vmax.f32 %v1711_v5, %v1712_v58  ;;  %v1695_v6 = vadd.f32 %v1685_v1, %v2858_v40  ;;  %v1668_v42 = vrot.slane %v3042_v30, 4  ;;  %v2110_v47 = vpop.f32.mrf.mxu0 }
 0x1bf   :  { %v1696_v35 = vadd.f32 %v1684_v27, %v2871_v62  ;;  %v1673_v0 = vrot.slane %v1506_v44, 4  ;;  %v3054_v60 = vadd.f32 %v2060_v46, %v1478_v21  ;;  %v1498_v24 = vadd.f32 %v2075_v2, %v1497_v36 }
 0x1c0   :  { %v1728_v49 = vrot.slane %v1727_v55, 2  ;;  %v1733_v59 = vrot.slane %v1732_v17, 4  ;;  %v1713_v52 = vadd.f32 %v3030_v13, %v1695_v6  ;;  %v1490_v22 = vadd.f32 %v2110_v47, %v2069_v25  ;;  %v1481_v44 = vpop.f32.mrf.mxu0 }
 0x1c1   :  { %v1714_v43 = vadd.f32 %v3021_v23, %v1696_v35  ;;  %v1675_v33 = vsel %vm1674_vm5, %v1672_v20, %v1673_v0  ;;  %v1690_v40 = vsel %vm1674_vm5, %v1673_v0, %v1658_v54  ;;  %v1666_v62 = vrot.slane %v3054_v60, 4 }
 0x1c2   :  { %v1729_v46 = vmax.f32 %v1727_v55, %v1728_v49  ;;  %v1734_v34 = vmax.f32 %v1732_v17, %v1733_v59  ;;  %v1705_v2 = vadd.f32 %v1675_v33, %v2993_v51  ;;  %v1706_v31 = vadd.f32 %v1690_v40, %v2995_v29 }
 0x1c3   :  { %v1739_v56 = vmax.f32 %v1713_v52, %v1714_v43  ;;  %v1682_v25 = vsel %vm1674_vm5, %v1665_v61, %v1666_v62  ;;  %v1671_v48 = vrot.slane %v1498_v24, 4  ;;  %v1669_v38 = vrot.slane %v1490_v22, 4 }
 0x1c4   :  { %v1730_v45 = vrot.slane %v1729_v46, 1  ;;  %v1735_v50 = vrot.slane %v1734_v34, 2  ;;  %v1723_v19 = vadd.f32 %v3030_v13, %v1705_v2  ;;  %v1724_v54 = vadd.f32 %v3021_v23, %v1706_v31 }
 0x1c5   :  { %v1740_v5 = vrot.slane %v1739_v56, 4  ;;  %v1698_v11 = vadd.f32 %v1682_v25, %v2897_v41  ;;  %v1676_v51 = vsel %vm1674_vm5, %v1671_v48, %v1672_v20  ;;  %v1677_v29 = vsel %vm1674_vm5, %v1670_v28, %v1671_v48 }
 0x1c6   :  { %v1731_v15 = vmax.f32 %v1729_v46, %v1730_v45  ;;  %v1736_v18 = vmax.f32 %v1734_v34, %v1735_v50  ;;  %v1774_v61 = vmax.f32 %v1723_v19, %v1724_v54  ;;  %v1703_v57 = vadd.f32 %v1677_v29, %v2962_v10 }
 0x1c7   :  { %v1715_v63 = vadd.f32 %v3030_v13, %v1697_v12  ;;  %v1741_v26 = vmax.f32 %v1739_v56, %v1740_v5  ;;  %v1716_v41 = vadd.f32 %v3021_v23, %v1698_v11  ;;  %v1704_v16 = vadd.f32 %v1676_v51, %v2971_v14 }
 0x1c8   :  { %v1737_v37 = vrot.slane %v1736_v18, 1  ;;  %v1775_v58 = vrot.slane %v1774_v61, 4  ;;  %v1721_v20 = vadd.f32 %v3030_v13, %v1703_v57  ;;  %v1678_v21 = vsel %vm1674_vm5, %v1669_v38, %v1670_v28 }
 0x1c9   :  { %v1742_v10 = vrot.slane %v1741_v26, 2  ;;  %v1746_v27 = vmax.f32 %v1715_v63, %v1716_v41  ;;  %v1722_v1 = vadd.f32 %v3021_v23, %v1704_v16  ;;  %v1679_v12 = vsel %vm1674_vm5, %v1668_v42, %v1669_v38 }
 0x1ca   :  { %v2063_v14 = vadd.f32 %v2934_v9, %v2928_v4  ;;  %v1788_v36 = vadd.f32 %v3080_v8, %v1731_v15  ;;  %v1738_v55 = vmax.f32 %v1736_v18, %v1737_v37  ;;  %v1701_v17 = vadd.f32 %v1679_v12, %v2936_v7 }
 0x1cb   :  { %v1743_v6 = vmax.f32 %v1741_v26, %v1742_v10  ;;  %v1747_v28 = vrot.slane %v1746_v27, 4  ;;  %v1767_v47 = vmax.f32 %v1721_v20, %v1722_v1  ;;  %v1702_v35 = vadd.f32 %v1678_v21, %v2949_v39  ;;  %v2017_v39 = vld [vmem:[%s3131_s4] ss:$0 sm:$0xff] }
 0x1cc   :  { %v1789_v0 = vadd.f32 %v3080_v8, %v1738_v55  ;;  %v1776_v60 = vmax.f32 %v1774_v61, %v1775_v58  ;;  %v1719_v24 = vadd.f32 %v3030_v13, %v1701_v17  ;;  %v1482_v49 = vadd.f32 %v2063_v14, %v1481_v44 }
 0x1cd   :  { %v1744_v59 = vrot.slane %v1743_v6, 1  ;;  %v1748_v52 = vmax.f32 %v1746_v27, %v1747_v28  ;;  %v1768_v22 = vrot.slane %v1767_v47, 4  ;;  %v1720_v4 = vadd.f32 %v3021_v23, %v1702_v35 }
 0x1ce   :  { %v1796_v9 = vmax.f32 %v1788_v36, 0.0  ;;  %v1797_v43 = vmax.f32 %v1789_v0, 0.0  ;;  %v1667_v33 = vrot.slane %v1482_v49, 4  ;;  %v1777_v56 = vrot.slane %v1776_v60, 2 }
 0x1cf   :  { %v1745_v7 = vmax.f32 %v1743_v6, %v1744_v59  ;;  %v1749_v40 = vrot.slane %v1748_v52, 2  ;;  %v1769_v46 = vmax.f32 %v1767_v47, %v1768_v22  ;;  %v1760_v34 = vmax.f32 %v1719_v24, %v1720_v4 }
 0x1d0   :  { %v1680_v2 = vsel %vm1674_vm5, %v1667_v33, %v1668_v42  ;;  %v1681_v31 = vsel %vm1674_vm5, %v1666_v62, %v1667_v33  ;;  %v1812_v25 = vmul.f32 %v2017_v39, %v1797_v43  ;;  %v1811_v5 = vmul.f32 %v2017_v39, %v1796_v9 }
 0x1d1   :  { %v1750_v48 = vmax.f32 %v1748_v52, %v1749_v40  ;;  %v1770_v38 = vrot.slane %v1769_v46, 2  ;;  %v1761_v45 = vrot.slane %v1760_v34, 4  ;;  %v1699_v50 = vadd.f32 %v1681_v31, %v2910_v53 }
 0x1d2   :  { %v1700_v19 = vadd.f32 %v1680_v2, %v2923_v3  ;;  %v1790_v54 = vadd.f32 %v3080_v8, %v1745_v7  ;;  %v1827_v11 = vrot.slane %v1812_v25, 7  ;;  %v1778_v57 = vmax.f32 %v1776_v60, %v1777_v56 }
 0x1d3   :  { %v1751_v30 = vrot.slane %v1750_v48, 1  ;;  %v1762_v51 = vmax.f32 %v1760_v34, %v1761_v45  ;;  %v1717_v42 = vadd.f32 %v3030_v13, %v1699_v50  ;;  %v1771_v62 = vmax.f32 %v1769_v46, %v1770_v38 }
 0x1d4   :  { %v1718_v32 = vadd.f32 %v3021_v23, %v1700_v19  ;;  %v1798_v29 = vmax.f32 %v1790_v54, 0.0  ;;  %v1829_v15 = vsel %vm1828_vm6, %v1827_v11, %v1811_v5  ;;  %v1779_v13 = vrot.slane %v1778_v57, 1 }
 0x1d5   :  { %v1752_v18 = vmax.f32 %v1750_v48, %v1751_v30  ;;  %v1763_v61 = vrot.slane %v1762_v51, 2  ;;  %v1772_v16 = vrot.slane %v1771_v62, 1 }
 0x1d6   :  { %v1753_v53 = vmax.f32 %v1717_v42, %v1718_v32  ;;  %v1813_v63 = vmul.f32 %v2017_v39, %v1798_v29  ;;  %v1780_v44 = vmax.f32 %v1778_v57, %v1779_v13 }
 0x1d7   :  { %v1764_v3 = vmax.f32 %v1762_v51, %v1763_v61  ;;  %v1791_v26 = vadd.f32 %v3080_v8, %v1752_v18  ;;  %v1773_v12 = vmax.f32 %v1771_v62, %v1772_v16 }
 0x1d8   :  { %v1754_v41 = vrot.slane %v1753_v53, 4  ;;  %v1830_v37 = vrot.slane %v1813_v63, 6  ;;  %v1795_v47 = vadd.f32 %v3080_v8, %v1780_v44 }
 0x1d9   :  { %v1765_v58 = vrot.slane %v1764_v3, 1  ;;  %v1799_v20 = vmax.f32 %v1791_v26, 0.0  ;;  %v1794_v28 = vadd.f32 %v3080_v8, %v1773_v12 }
 0x1da   :  { %v1755_v23 = vmax.f32 %v1753_v53, %v1754_v41  ;;  %v1832_v21 = vsel %vm1831_vm7, %v1830_v37, %v1829_v15  ;;  %v1803_v49 = vmax.f32 %v1795_v47, 0.0 }
 0x1db   :  { %v1766_v10 = vmax.f32 %v1764_v3, %v1765_v58  ;;  %v1814_v27 = vmul.f32 %v2017_v39, %v1799_v20  ;;  %v1802_v24 = vmax.f32 %v1794_v28, 0.0 }
 0x1dc   :  { %v1756_v1 = vrot.slane %v1755_v23, 2  ;;  %v1818_v9 = vmul.f32 %v2017_v39, %v1803_v49 }
 0x1dd   :  { %v1833_v14 = vrot.slane %v1814_v27, 5  ;;  %v1793_v55 = vadd.f32 %v3080_v8, %v1766_v10  ;;  %v1817_v4 = vmul.f32 %v2017_v39, %v1802_v24 }
 0x1de   :  { %v1757_v36 = vmax.f32 %v1755_v23, %v1756_v1  ;;  %v1845_v34 = vrot.slane %v1818_v9, 1 }
 0x1df   :  { %v1835_v17 = vsel %vm1834_vm8, %v1833_v14, %v1832_v21  ;;  %v1801_v0 = vmax.f32 %v1793_v55, 0.0  ;;  %v1842_v40 = vrot.slane %v1817_v4, 2 }
 0x1e0   :  { %v1758_v6 = vrot.slane %v1757_v36, 1 }
 0x1e1   :  { %v1816_v52 = vmul.f32 %v2017_v39, %v1801_v0 }
 0x1e2   :  { %v1759_v35 = vmax.f32 %v1757_v36, %v1758_v6 }
 0x1e3   :  { %v1839_v33 = vrot.slane %v1816_v52, 3 }
 0x1e4   :  { %v1792_v60 = vadd.f32 %v3080_v8, %v1759_v35  ;;  %v1852_v8 = vstv %s3132_s5 }
 0x1e6   :  { %v1800_v59 = vmax.f32 %v1792_v60, 0.0 }
 0x1e8   :  { %v1815_v22 = vmul.f32 %v2017_v39, %v1800_v59 }
 0x1ea   :  { %v1836_v43 = vrot.slane %v1815_v22, 4 }
 0x1ec   :  { %v1838_v7 = vsel %vm1837_vm9, %v1836_v43, %v1835_v17 }
 0x1ed   :  { %v1841_v46 = vsel %vm1840_vm10, %v1839_v33, %v1838_v7 }
 0x1ee   :  { %v1844_v2 = vsel %vm1843_vm11, %v1842_v40, %v1841_v46 }
 0x1ef   :  { %v1847_v31 = vsel %vm1846_vm12, %v1845_v34, %v1844_v2 }
 0x1f0   :  { %1849 = vadd.xlane.f32.xlu0 %v1847_v31 }
 0x279   :  { %v1850_v39 = vpop.xlane.xlu0 %1849 }
 0x27a   :  { %v1853_v56 = vadd.f32 %v1852_v8, %v1850_v39 }
 0x27c   :  { %1854 = vst [vmem:[#allocation9] sm:$0xff] %v1853_v56 }
 0x27d   :  { %2370 = shalt.err (!%p2367_p5)
}
 0x27e   :  { %1864 = dma.vmem_to_hbm [thread:$0]  %s1862_s20, 128, %s3133_s6, [#allocation5]  }
 0x27f   :  { %2383 = dma.done.wait [#allocation5], 128  }
 0x280   :  { %2384 = vsyncadd [#allocation5], 4294967168 }
 0x281   :  { %1868 = vsyncpa [#allocation4], 1 }
 0x282   :  { %1869 = vsyncpa [#allocation7], 1 }
 0x283   :  { %1870 = vsyncpa [#allocation5], 1 }

</bundles_post_ra>
